<compile_context>
chip_gen: v6e
topology: v6e:2x2x1
jax: 0.10.0
libtpu: 0.0.40
codegen_flags: <defaults>
</compile_context>

<pallas_src>
import jax
import jax.numpy as jnp
from jax.experimental import pallas as pl
from jax.experimental.pallas import tpu as pltpu

NPAD = 128                      # lane-dense padded output width for every matmul
VMEM_LIMIT = 32 * 1024 * 1024   # explicit scoped-VMEM limit (helps v5e's 16MiB default)


# ----------------------------- Pallas kernels ------------------------------

def _conv_pool_kernel(p0_ref, p1_ref, p2_ref, p3_ref, w_ref, b_ref, o_ref):
    """Fused conv (im2col matmul over four pool phases) + bias + ReLU + 2x2 maxpool.

    p*_ref: (tm, Kpad) bf16 patch matrices, one per (oh%2, ow%2) pool phase.
    w_ref : (Kpad, 128) bf16 flattened conv weights (zero-padded rows/cols).
    b_ref : (1, 128) f32 bias (zero-padded).
    o_ref : (tm, 128) bf16 pooled activations.
    Running max keeps at most two f32 accumulators live (no vreg spills).
    """
    w = w_ref[...]
    acc = jnp.dot(p0_ref[...], w, preferred_element_type=jnp.float32)
    acc = jnp.maximum(acc, jnp.dot(p1_ref[...], w,
                                   preferred_element_type=jnp.float32))
    acc = jnp.maximum(acc, jnp.dot(p2_ref[...], w,
                                   preferred_element_type=jnp.float32))
    acc = jnp.maximum(acc, jnp.dot(p3_ref[...], w,
                                   preferred_element_type=jnp.float32))
    o_ref[...] = jnp.maximum(acc + b_ref[...], 0.0).astype(o_ref.dtype)


def _fc_head_kernel(x_ref, w1_ref, b1_ref, w2_ref, b2_ref, w3_ref, b3_ref,
                    o_ref):
    """Fused fc1+ReLU -> fc2+ReLU -> fc3, chained in VMEM (no HBM round-trips)."""
    h = jnp.dot(x_ref[...], w1_ref[...], preferred_element_type=jnp.float32)
    h = jnp.maximum(h + b1_ref[...], 0.0).astype(jnp.bfloat16)
    h = jnp.dot(h, w2_ref[...], preferred_element_type=jnp.float32)
    h = jnp.maximum(h + b2_ref[...], 0.0).astype(jnp.bfloat16)
    h = jnp.dot(h, w3_ref[...], preferred_element_type=jnp.float32)
    o_ref[...] = (h + b3_ref[...]).astype(o_ref.dtype)


# ------------------------------ tiling helpers ------------------------------

def _round_up(x, m):
    return ((x + m - 1) // m) * m


def _tile_rows(M, cap=1024):
    """Pick (tm, Mpad): tm | Mpad, tm % 16 == 0, and >= 2 grid steps whenever
    possible so the 'parallel' M axis can shard across both v7x TensorCores."""
    if M > cap:
        return cap, _round_up(M, cap)
    Mpad = _round_up(M, 32)
    return Mpad // 2, Mpad


# ------------------------------- glue (JAX) ---------------------------------

def _im2col_pooled(x, kh, kw):
    """Strided im2col grouped by 2x2-pool phase.

    x: (B, H, W, C) NHWC bf16.  Returns four (B*PH*PW, kh*kw*C) matrices, one
    per (oh%2, ow%2) phase, patch element order (kh, kw, cin).
    """
    B, H, W, C = x.shape
    OH, OW = H - kh + 1, W - kw + 1
    PH, PW = OH // 2, OW // 2
    outs = []
    for a in (0, 1):
        for c in (0, 1):
            cols = []
            for i in range(kh):
                for j in range(kw):
                    rs, cs = a + i, c + j
                    cols.append(x[:, rs:rs + 2 * PH:2, cs:cs + 2 * PW:2, :])
            p = jnp.concatenate(cols, axis=-1)          # (B, PH, PW, kh*kw*C)
            outs.append(p.reshape(B * PH * PW, kh * kw * C))
    return outs, PH, PW


def conv_relu_pool(x, w_flat, b_row, kh, kw):
    """One pallas_call: conv(valid, stride1) + bias + ReLU + maxpool2x2.

    x: (B,H,W,C) NHWC bf16.  w_flat: (Kpad, 128) bf16.  b_row: (1, 128) f32.
    Returns ((Mpad, 128) bf16 lane-dense output, M, PH, PW).
    """
    taps, PH, PW = _im2col_pooled(x, kh, kw)
    M, K = taps[0].shape
    Kpad = w_flat.shape[0]
    tm, Mpad = _tile_rows(M, cap=1024)
    taps = [jnp.pad(t, ((0, Mpad - M), (0, Kpad - K))) for t in taps]

    out = pl.pallas_call(
        _conv_pool_kernel,
        out_shape=jax.ShapeDtypeStruct((Mpad, NPAD), jnp.bfloat16),
        grid=(Mpad // tm,),
        in_specs=[pl.BlockSpec((tm, Kpad), lambda i: (i, 0))] * 4 + [
            pl.BlockSpec((Kpad, NPAD), lambda i: (0, 0)),
            pl.BlockSpec((1, NPAD), lambda i: (0, 0)),
        ],
        out_specs=pl.BlockSpec((tm, NPAD), lambda i: (i, 0)),
        compiler_params=pltpu.CompilerParams(
            dimension_semantics=("parallel",),
            vmem_limit_bytes=VMEM_LIMIT),
    )(*taps, w_flat, b_row)

    return out, M, PH, PW


def fc_head(x, pp):
    """Fused fc1->fc2->fc3 head.  x: (B, 5*5*128) bf16.  Returns (B, 10) f32."""
    M, K = x.shape
    tm, Mpad = _tile_rows(M, cap=512)
    xp = jnp.pad(x, ((0, Mpad - M), (0, 0)))

    out = pl.pallas_call(
        _fc_head_kernel,
        out_shape=jax.ShapeDtypeStruct((Mpad, NPAD), jnp.float32),
        grid=(Mpad // tm,),
        in_specs=[
            pl.BlockSpec((tm, K), lambda i: (i, 0)),
            pl.BlockSpec((K, NPAD), lambda i: (0, 0)),
            pl.BlockSpec((1, NPAD), lambda i: (0, 0)),
            pl.BlockSpec((NPAD, NPAD), lambda i: (0, 0)),
            pl.BlockSpec((1, NPAD), lambda i: (0, 0)),
            pl.BlockSpec((NPAD, NPAD), lambda i: (0, 0)),
            pl.BlockSpec((1, NPAD), lambda i: (0, 0)),
        ],
        out_specs=pl.BlockSpec((tm, NPAD), lambda i: (i, 0)),
        compiler_params=pltpu.CompilerParams(
            dimension_semantics=("parallel",),
            vmem_limit_bytes=VMEM_LIMIT),
    )(xp, pp['fc1_w'], pp['fc1_b'], pp['fc2_w'], pp['fc2_b'],
      pp['fc3_w'], pp['fc3_b'])

    return out[:M, :10]


# -------------------------- parameter preparation ---------------------------

def prepare_params(params):
    """One-time transform of torch-layout params into kernel-ready tensors:
    flatten / transpose / permute, zero-pad K to a multiple of 128 and the lane
    dim to 128, cast weights to bf16 and biases to f32."""

    def pad_bias(b):
        return jnp.pad(b, (0, NPAD - b.shape[0])).reshape(1, NPAD).astype(
            jnp.float32)

    def conv_w(w):  # (Cout,Cin,KH,KW) -> (Kpad, 128) bf16, row order (kh,kw,cin)
        co, ci, kh, kw = w.shape
        k = kh * kw * ci
        kpad = _round_up(k, 128)
        wf = jnp.transpose(w, (2, 3, 1, 0)).reshape(k, co)
        wf = jnp.pad(wf, ((0, kpad - k), (0, NPAD - co)))
        return wf.astype(jnp.bfloat16)

    def fc1_w(w):
        # (120, 400) with torch (c,h,w) flatten order -> rows in NHWC lane-dense
        # order (h, w, c_pad[0:128]) so the conv2 output (B, 5*5*128) feeds fc1
        # directly (no transpose / channel slice between the pallas_calls).
        w4 = w.reshape(120, 16, 5, 5)                  # (out, c, h, w)
        w4 = jnp.transpose(w4, (2, 3, 1, 0))           # (h, w, c, out)
        w4 = jnp.pad(w4, ((0, 0), (0, 0), (0, NPAD - 16), (0, NPAD - 120)))
        return w4.reshape(5 * 5 * NPAD, NPAD).astype(jnp.bfloat16)

    def fc_w(w):  # (out, in) -> (128, 128) bf16
        wt = w.T
        return jnp.pad(wt, ((0, NPAD - wt.shape[0]),
                            (0, NPAD - wt.shape[1]))).astype(jnp.bfloat16)

    return {
        'conv1_w': conv_w(params['conv1_w']),   # (128, 128)
        'conv1_b': pad_bias(params['conv1_b']),
        'conv2_w': conv_w(params['conv2_w']),   # (256, 128)
        'conv2_b': pad_bias(params['conv2_b']),
        'fc1_w': fc1_w(params['fc1_w']),        # (3200, 128)
        'fc1_b': pad_bias(params['fc1_b']),
        'fc2_w': fc_w(params['fc2_w']),         # (128, 128)
        'fc2_b': pad_bias(params['fc2_b']),
        'fc3_w': fc_w(params['fc3_w']),         # (128, 128)
        'fc3_b': pad_bias(params['fc3_b']),
    }


# -------------------------------- forward -----------------------------------

def lenet_forward(x_nchw, pp):
    # Cast to bf16 BEFORE the layout transpose / im2col expansion.
    x = jnp.transpose(x_nchw.astype(jnp.bfloat16), (0, 2, 3, 1))  # (B,32,32,3)
    B = x.shape[0]

    o1, M1, PH1, PW1 = conv_relu_pool(x, pp['conv1_w'], pp['conv1_b'], 5, 5)
    h1 = o1[:M1, :6].reshape(B, PH1, PW1, 6)                     # (B,14,14,6)

    o2, M2, PH2, PW2 = conv_relu_pool(h1, pp['conv2_w'], pp['conv2_b'], 5, 5)
    # Lane-dense features: (b, ph, pw, c_pad) flattened contiguously; padded
    # channels are exact zeros and fc1_w's matching rows are zero too.
    feats = o2[:M2].reshape(B, PH2 * PW2 * NPAD)                  # (B, 3200)

    return fc_head(feats, pp)                                     # (B, 10)


def init_params(key):
    """Deterministic init mimicking PyTorch's U(-1/sqrt(fan_in), 1/sqrt(fan_in))."""
    ks = jax.random.split(key, 10)

    def u(k, shape, fan_in):
        bound = 1.0 / (fan_in ** 0.5)
        return jax.random.uniform(k, shape, jnp.float32, -bound, bound)

    return {
        'conv1_w': u(ks[0], (6, 3, 5, 5), 3 * 5 * 5),
        'conv1_b': u(ks[1], (6,), 3 * 5 * 5),
        'conv2_w': u(ks[2], (16, 6, 5, 5), 6 * 5 * 5),
        'conv2_b': u(ks[3], (16,), 6 * 5 * 5),
        'fc1_w':   u(ks[4], (120, 400), 400),
        'fc1_b':   u(ks[5], (120,), 400),
        'fc2_w':   u(ks[6], (84, 120), 120),
        'fc2_b':   u(ks[7], (84,), 120),
        'fc3_w':   u(ks[8], (10, 84), 84),
        'fc3_b':   u(ks[9], (10,), 84),
    }


if __name__ == "__main__":
    key = jax.random.PRNGKey(0)
    pkey, xkey = jax.random.split(key)
    params = init_params(pkey)
    pp = prepare_params(params)  # one-time weight prep (transpose/permute/pad/cast)
    # LeNet requires 3x32x32 input so that fc1 sees 16*5*5 features.
    x = jax.random.normal(xkey, (2, 3, 32, 32), jnp.float32)

    fwd = jax.jit(lenet_forward)
    out = fwd(x, pp)
    jax.block_until_ready(out)
    assert out.shape == (2, 10), out.shape
    assert bool(jnp.all(jnp.isfinite(out)))
    print("KERNEL_OK")
</pallas_src>

<mosaic_0001>
module attributes {stable_mosaic.version = 11 : i64} {
  func.func @_conv_pool_kernel(%arg0: i32, %arg1: memref<208x128xbf16, #tpu.memory_space<vmem>>, %arg2: memref<208x128xbf16, #tpu.memory_space<vmem>>, %arg3: memref<208x128xbf16, #tpu.memory_space<vmem>>, %arg4: memref<208x128xbf16, #tpu.memory_space<vmem>>, %arg5: memref<128x128xbf16, #tpu.memory_space<vmem>>, %arg6: memref<1x128xf32, #tpu.memory_space<vmem>>, %arg7: memref<208x128xbf16, #tpu.memory_space<vmem>>) attributes {dimension_semantics = [#tpu.dimension_semantics<parallel>], iteration_bounds = array<i64: 2>, scalar_prefetch = 0 : i64, scratch_operands = 0 : i64, tpu.core_type = #tpu.core_type<tc>, window_params = [{transform_indices = @transform_0, window_bounds = array<i64: 208, 128>}, {transform_indices = @transform_1, window_bounds = array<i64: 208, 128>}, {transform_indices = @transform_2, window_bounds = array<i64: 208, 128>}, {transform_indices = @transform_3, window_bounds = array<i64: 208, 128>}, {pipeline_mode = #tpu.pipeline_mode<synchronous>, transform_indices = @transform_4, window_bounds = array<i64: 128, 128>}, {pipeline_mode = #tpu.pipeline_mode<synchronous>, transform_indices = @transform_5, window_bounds = array<i64: 1, 128>}, {transform_indices = @transform_6, window_bounds = array<i64: 208, 128>}]} {
    %c0 = arith.constant 0 : index
    %c0_0 = arith.constant 0 : index
    %0 = vector.load %arg5[%c0, %c0_0] : memref<128x128xbf16, #tpu.memory_space<vmem>>, vector<128x128xbf16>
    %c0_1 = arith.constant 0 : index
    %c0_2 = arith.constant 0 : index
    %1 = vector.load %arg1[%c0_1, %c0_2] : memref<208x128xbf16, #tpu.memory_space<vmem>>, vector<208x128xbf16>
    %cst = arith.constant dense<0.000000e+00> : vector<208x128xf32>
    %2 = tpu.matmul %1, %0, %cst {dimension_numbers = #tpu.dot_dimension_numbers<[1], [0], [0], [1], [0, 0, 1, 1], [], []>} : vector<208x128xbf16>, vector<128x128xbf16>, vector<208x128xf32> -> vector<208x128xf32>
    %c0_3 = arith.constant 0 : index
    %c0_4 = arith.constant 0 : index
    %3 = vector.load %arg2[%c0_3, %c0_4] : memref<208x128xbf16, #tpu.memory_space<vmem>>, vector<208x128xbf16>
    %cst_5 = arith.constant dense<0.000000e+00> : vector<208x128xf32>
    %4 = tpu.matmul %3, %0, %cst_5 {dimension_numbers = #tpu.dot_dimension_numbers<[1], [0], [0], [1], [0, 0, 1, 1], [], []>} : vector<208x128xbf16>, vector<128x128xbf16>, vector<208x128xf32> -> vector<208x128xf32>
    %5 = arith.maximumf %2, %4 : vector<208x128xf32>
    %c0_6 = arith.constant 0 : index
    %c0_7 = arith.constant 0 : index
    %6 = vector.load %arg3[%c0_6, %c0_7] : memref<208x128xbf16, #tpu.memory_space<vmem>>, vector<208x128xbf16>
    %cst_8 = arith.constant dense<0.000000e+00> : vector<208x128xf32>
    %7 = tpu.matmul %6, %0, %cst_8 {dimension_numbers = #tpu.dot_dimension_numbers<[1], [0], [0], [1], [0, 0, 1, 1], [], []>} : vector<208x128xbf16>, vector<128x128xbf16>, vector<208x128xf32> -> vector<208x128xf32>
    %8 = arith.maximumf %5, %7 : vector<208x128xf32>
    %c0_9 = arith.constant 0 : index
    %c0_10 = arith.constant 0 : index
    %9 = vector.load %arg4[%c0_9, %c0_10] : memref<208x128xbf16, #tpu.memory_space<vmem>>, vector<208x128xbf16>
    %cst_11 = arith.constant dense<0.000000e+00> : vector<208x128xf32>
    %10 = tpu.matmul %9, %0, %cst_11 {dimension_numbers = #tpu.dot_dimension_numbers<[1], [0], [0], [1], [0, 0, 1, 1], [], []>} : vector<208x128xbf16>, vector<128x128xbf16>, vector<208x128xf32> -> vector<208x128xf32>
    %11 = arith.maximumf %8, %10 : vector<208x128xf32>
    %c0_12 = arith.constant 0 : index
    %c0_13 = arith.constant 0 : index
    %12 = vector.load %arg6[%c0_12, %c0_13] : memref<1x128xf32, #tpu.memory_space<vmem>>, vector<1x128xf32>
    %13 = vector.broadcast %12 : vector<1x128xf32> to vector<208x128xf32>
    %14 = arith.addf %11, %13 : vector<208x128xf32>
    %cst_14 = arith.constant 0.000000e+00 : f32
    %15 = vector.broadcast %cst_14 : f32 to vector<208x128xf32>
    %16 = arith.maximumf %14, %15 : vector<208x128xf32>
    %17 = arith.truncf %16 : vector<208x128xf32> to vector<208x128xbf16>
    %c0_15 = arith.constant 0 : index
    %c0_16 = arith.constant 0 : index
    %18 = vector.load %arg7[%c0_15, %c0_16] : memref<208x128xbf16, #tpu.memory_space<vmem>>, vector<208x128xbf16>
    tpu.vector_store %arg7[%c0_15, %c0_16], %17 {strides = array<i32>} : memref<208x128xbf16, #tpu.memory_space<vmem>>, vector<208x128xbf16>,
    return
  }
  func.func @transform_0(%arg0: i32) -> (i32, i32) {
    %c0_i32 = arith.constant 0 : i32
    %c0_i32_0 = arith.constant 0 : i32
    return %arg0, %c0_i32 : i32, i32
  }
  func.func @transform_1(%arg0: i32) -> (i32, i32) {
    %c0_i32 = arith.constant 0 : i32
    %c0_i32_0 = arith.constant 0 : i32
    return %arg0, %c0_i32 : i32, i32
  }
  func.func @transform_2(%arg0: i32) -> (i32, i32) {
    %c0_i32 = arith.constant 0 : i32
    %c0_i32_0 = arith.constant 0 : i32
    return %arg0, %c0_i32 : i32, i32
  }
  func.func @transform_3(%arg0: i32) -> (i32, i32) {
    %c0_i32 = arith.constant 0 : i32
    %c0_i32_0 = arith.constant 0 : i32
    return %arg0, %c0_i32 : i32, i32
  }
  func.func @transform_4(%arg0: i32) -> (i32, i32) {
    %c0_i32 = arith.constant 0 : i32
    %c0_i32_0 = arith.constant 0 : i32
    %c0_i32_1 = arith.constant 0 : i32
    return %c0_i32, %c0_i32_0 : i32, i32
  }
  func.func @transform_5(%arg0: i32) -> (i32, i32) {
    %c0_i32 = arith.constant 0 : i32
    %c0_i32_0 = arith.constant 0 : i32
    %c0_i32_1 = arith.constant 0 : i32
    return %c0_i32, %c0_i32_0 : i32, i32
  }
  func.func @transform_6(%arg0: i32) -> (i32, i32) {
    %c0_i32 = arith.constant 0 : i32
    %c0_i32_0 = arith.constant 0 : i32
    return %arg0, %c0_i32 : i32, i32
  }
}

module attributes {stable_mosaic.version = 11 : i64} {
  func.func @_conv_pool_kernel(%arg0: i32, %arg1: memref<32x256xbf16, #tpu.memory_space<vmem>>, %arg2: memref<32x256xbf16, #tpu.memory_space<vmem>>, %arg3: memref<32x256xbf16, #tpu.memory_space<vmem>>, %arg4: memref<32x256xbf16, #tpu.memory_space<vmem>>, %arg5: memref<256x128xbf16, #tpu.memory_space<vmem>>, %arg6: memref<1x128xf32, #tpu.memory_space<vmem>>, %arg7: memref<32x128xbf16, #tpu.memory_space<vmem>>) attributes {dimension_semantics = [#tpu.dimension_semantics<parallel>], iteration_bounds = array<i64: 2>, scalar_prefetch = 0 : i64, scratch_operands = 0 : i64, tpu.core_type = #tpu.core_type<tc>, window_params = [{transform_indices = @transform_0, window_bounds = array<i64: 32, 256>}, {transform_indices = @transform_1, window_bounds = array<i64: 32, 256>}, {transform_indices = @transform_2, window_bounds = array<i64: 32, 256>}, {transform_indices = @transform_3, window_bounds = array<i64: 32, 256>}, {pipeline_mode = #tpu.pipeline_mode<synchronous>, transform_indices = @transform_4, window_bounds = array<i64: 256, 128>}, {pipeline_mode = #tpu.pipeline_mode<synchronous>, transform_indices = @transform_5, window_bounds = array<i64: 1, 128>}, {transform_indices = @transform_6, window_bounds = array<i64: 32, 128>}]} {
    %c0 = arith.constant 0 : index
    %c0_0 = arith.constant 0 : index
    %0 = vector.load %arg5[%c0, %c0_0] : memref<256x128xbf16, #tpu.memory_space<vmem>>, vector<256x128xbf16>
    %c0_1 = arith.constant 0 : index
    %c0_2 = arith.constant 0 : index
    %1 = vector.load %arg1[%c0_1, %c0_2] : memref<32x256xbf16, #tpu.memory_space<vmem>>, vector<32x256xbf16>
    %cst = arith.constant dense<0.000000e+00> : vector<32x128xf32>
    %2 = tpu.matmul %1, %0, %cst {dimension_numbers = #tpu.dot_dimension_numbers<[1], [0], [0], [1], [0, 0, 1, 1], [], []>} : vector<32x256xbf16>, vector<256x128xbf16>, vector<32x128xf32> -> vector<32x128xf32>
    %c0_3 = arith.constant 0 : index
    %c0_4 = arith.constant 0 : index
    %3 = vector.load %arg2[%c0_3, %c0_4] : memref<32x256xbf16, #tpu.memory_space<vmem>>, vector<32x256xbf16>
    %cst_5 = arith.constant dense<0.000000e+00> : vector<32x128xf32>
    %4 = tpu.matmul %3, %0, %cst_5 {dimension_numbers = #tpu.dot_dimension_numbers<[1], [0], [0], [1], [0, 0, 1, 1], [], []>} : vector<32x256xbf16>, vector<256x128xbf16>, vector<32x128xf32> -> vector<32x128xf32>
    %5 = arith.maximumf %2, %4 : vector<32x128xf32>
    %c0_6 = arith.constant 0 : index
    %c0_7 = arith.constant 0 : index
    %6 = vector.load %arg3[%c0_6, %c0_7] : memref<32x256xbf16, #tpu.memory_space<vmem>>, vector<32x256xbf16>
    %cst_8 = arith.constant dense<0.000000e+00> : vector<32x128xf32>
    %7 = tpu.matmul %6, %0, %cst_8 {dimension_numbers = #tpu.dot_dimension_numbers<[1], [0], [0], [1], [0, 0, 1, 1], [], []>} : vector<32x256xbf16>, vector<256x128xbf16>, vector<32x128xf32> -> vector<32x128xf32>
    %8 = arith.maximumf %5, %7 : vector<32x128xf32>
    %c0_9 = arith.constant 0 : index
    %c0_10 = arith.constant 0 : index
    %9 = vector.load %arg4[%c0_9, %c0_10] : memref<32x256xbf16, #tpu.memory_space<vmem>>, vector<32x256xbf16>
    %cst_11 = arith.constant dense<0.000000e+00> : vector<32x128xf32>
    %10 = tpu.matmul %9, %0, %cst_11 {dimension_numbers = #tpu.dot_dimension_numbers<[1], [0], [0], [1], [0, 0, 1, 1], [], []>} : vector<32x256xbf16>, vector<256x128xbf16>, vector<32x128xf32> -> vector<32x128xf32>
    %11 = arith.maximumf %8, %10 : vector<32x128xf32>
    %c0_12 = arith.constant 0 : index
    %c0_13 = arith.constant 0 : index
    %12 = vector.load %arg6[%c0_12, %c0_13] : memref<1x128xf32, #tpu.memory_space<vmem>>, vector<1x128xf32>
    %13 = vector.broadcast %12 : vector<1x128xf32> to vector<32x128xf32>
    %14 = arith.addf %11, %13 : vector<32x128xf32>
    %cst_14 = arith.constant 0.000000e+00 : f32
    %15 = vector.broadcast %cst_14 : f32 to vector<32x128xf32>
    %16 = arith.maximumf %14, %15 : vector<32x128xf32>
    %17 = arith.truncf %16 : vector<32x128xf32> to vector<32x128xbf16>
    %c0_15 = arith.constant 0 : index
    %c0_16 = arith.constant 0 : index
    %18 = vector.load %arg7[%c0_15, %c0_16] : memref<32x128xbf16, #tpu.memory_space<vmem>>, vector<32x128xbf16>
    tpu.vector_store %arg7[%c0_15, %c0_16], %17 {strides = array<i32>} : memref<32x128xbf16, #tpu.memory_space<vmem>>, vector<32x128xbf16>,
    return
  }
  func.func @transform_0(%arg0: i32) -> (i32, i32) {
    %c0_i32 = arith.constant 0 : i32
    %c0_i32_0 = arith.constant 0 : i32
    return %arg0, %c0_i32 : i32, i32
  }
  func.func @transform_1(%arg0: i32) -> (i32, i32) {
    %c0_i32 = arith.constant 0 : i32
    %c0_i32_0 = arith.constant 0 : i32
    return %arg0, %c0_i32 : i32, i32
  }
  func.func @transform_2(%arg0: i32) -> (i32, i32) {
    %c0_i32 = arith.constant 0 : i32
    %c0_i32_0 = arith.constant 0 : i32
    return %arg0, %c0_i32 : i32, i32
  }
  func.func @transform_3(%arg0: i32) -> (i32, i32) {
    %c0_i32 = arith.constant 0 : i32
    %c0_i32_0 = arith.constant 0 : i32
    return %arg0, %c0_i32 : i32, i32
  }
  func.func @transform_4(%arg0: i32) -> (i32, i32) {
    %c0_i32 = arith.constant 0 : i32
    %c0_i32_0 = arith.constant 0 : i32
    %c0_i32_1 = arith.constant 0 : i32
    return %c0_i32, %c0_i32_0 : i32, i32
  }
  func.func @transform_5(%arg0: i32) -> (i32, i32) {
    %c0_i32 = arith.constant 0 : i32
    %c0_i32_0 = arith.constant 0 : i32
    %c0_i32_1 = arith.constant 0 : i32
    return %c0_i32, %c0_i32_0 : i32, i32
  }
  func.func @transform_6(%arg0: i32) -> (i32, i32) {
    %c0_i32 = arith.constant 0 : i32
    %c0_i32_0 = arith.constant 0 : i32
    return %arg0, %c0_i32 : i32, i32
  }
}

module attributes {stable_mosaic.version = 11 : i64} {
  func.func @_fc_head_kernel(%arg0: i32, %arg1: memref<16x3200xbf16, #tpu.memory_space<vmem>>, %arg2: memref<3200x128xbf16, #tpu.memory_space<vmem>>, %arg3: memref<1x128xf32, #tpu.memory_space<vmem>>, %arg4: memref<128x128xbf16, #tpu.memory_space<vmem>>, %arg5: memref<1x128xf32, #tpu.memory_space<vmem>>, %arg6: memref<128x128xbf16, #tpu.memory_space<vmem>>, %arg7: memref<1x128xf32, #tpu.memory_space<vmem>>, %arg8: memref<16x128xf32, #tpu.memory_space<vmem>>) attributes {dimension_semantics = [#tpu.dimension_semantics<parallel>], iteration_bounds = array<i64: 2>, scalar_prefetch = 0 : i64, scratch_operands = 0 : i64, tpu.core_type = #tpu.core_type<tc>, window_params = [{transform_indices = @transform_0, window_bounds = array<i64: 16, 3200>}, {pipeline_mode = #tpu.pipeline_mode<synchronous>, transform_indices = @transform_1, window_bounds = array<i64: 3200, 128>}, {pipeline_mode = #tpu.pipeline_mode<synchronous>, transform_indices = @transform_2, window_bounds = array<i64: 1, 128>}, {pipeline_mode = #tpu.pipeline_mode<synchronous>, transform_indices = @transform_3, window_bounds = array<i64: 128, 128>}, {pipeline_mode = #tpu.pipeline_mode<synchronous>, transform_indices = @transform_4, window_bounds = array<i64: 1, 128>}, {pipeline_mode = #tpu.pipeline_mode<synchronous>, transform_indices = @transform_5, window_bounds = array<i64: 128, 128>}, {pipeline_mode = #tpu.pipeline_mode<synchronous>, transform_indices = @transform_6, window_bounds = array<i64: 1, 128>}, {transform_indices = @transform_7, window_bounds = array<i64: 16, 128>}]} {
    %c0 = arith.constant 0 : index
    %c0_0 = arith.constant 0 : index
    %0 = vector.load %arg1[%c0, %c0_0] : memref<16x3200xbf16, #tpu.memory_space<vmem>>, vector<16x3200xbf16>
    %c0_1 = arith.constant 0 : index
    %c0_2 = arith.constant 0 : index
    %1 = vector.load %arg2[%c0_1, %c0_2] : memref<3200x128xbf16, #tpu.memory_space<vmem>>, vector<3200x128xbf16>
    %cst = arith.constant dense<0.000000e+00> : vector<16x128xf32>
    %2 = tpu.matmul %0, %1, %cst {dimension_numbers = #tpu.dot_dimension_numbers<[1], [0], [0], [1], [0, 0, 1, 1], [], []>} : vector<16x3200xbf16>, vector<3200x128xbf16>, vector<16x128xf32> -> vector<16x128xf32>
    %c0_3 = arith.constant 0 : index
    %c0_4 = arith.constant 0 : index
    %3 = vector.load %arg3[%c0_3, %c0_4] : memref<1x128xf32, #tpu.memory_space<vmem>>, vector<1x128xf32>
    %4 = vector.broadcast %3 : vector<1x128xf32> to vector<16x128xf32>
    %5 = arith.addf %2, %4 : vector<16x128xf32>
    %cst_5 = arith.constant 0.000000e+00 : f32
    %6 = vector.broadcast %cst_5 : f32 to vector<16x128xf32>
    %7 = arith.maximumf %5, %6 : vector<16x128xf32>
    %8 = arith.truncf %7 : vector<16x128xf32> to vector<16x128xbf16>
    %c0_6 = arith.constant 0 : index
    %c0_7 = arith.constant 0 : index
    %9 = vector.load %arg4[%c0_6, %c0_7] : memref<128x128xbf16, #tpu.memory_space<vmem>>, vector<128x128xbf16>
    %cst_8 = arith.constant dense<0.000000e+00> : vector<16x128xf32>
    %10 = tpu.matmul %8, %9, %cst_8 {dimension_numbers = #tpu.dot_dimension_numbers<[1], [0], [0], [1], [0, 0, 1, 1], [], []>} : vector<16x128xbf16>, vector<128x128xbf16>, vector<16x128xf32> -> vector<16x128xf32>
    %c0_9 = arith.constant 0 : index
    %c0_10 = arith.constant 0 : index
    %11 = vector.load %arg5[%c0_9, %c0_10] : memref<1x128xf32, #tpu.memory_space<vmem>>, vector<1x128xf32>
    %12 = vector.broadcast %11 : vector<1x128xf32> to vector<16x128xf32>
    %13 = arith.addf %10, %12 : vector<16x128xf32>
    %cst_11 = arith.constant 0.000000e+00 : f32
    %14 = vector.broadcast %cst_11 : f32 to vector<16x128xf32>
    %15 = arith.maximumf %13, %14 : vector<16x128xf32>
    %16 = arith.truncf %15 : vector<16x128xf32> to vector<16x128xbf16>
    %c0_12 = arith.constant 0 : index
    %c0_13 = arith.constant 0 : index
    %17 = vector.load %arg6[%c0_12, %c0_13] : memref<128x128xbf16, #tpu.memory_space<vmem>>, vector<128x128xbf16>
    %cst_14 = arith.constant dense<0.000000e+00> : vector<16x128xf32>
    %18 = tpu.matmul %16, %17, %cst_14 {dimension_numbers = #tpu.dot_dimension_numbers<[1], [0], [0], [1], [0, 0, 1, 1], [], []>} : vector<16x128xbf16>, vector<128x128xbf16>, vector<16x128xf32> -> vector<16x128xf32>
    %c0_15 = arith.constant 0 : index
    %c0_16 = arith.constant 0 : index
    %19 = vector.load %arg7[%c0_15, %c0_16] : memref<1x128xf32, #tpu.memory_space<vmem>>, vector<1x128xf32>
    %20 = vector.broadcast %19 : vector<1x128xf32> to vector<16x128xf32>
    %21 = arith.addf %18, %20 : vector<16x128xf32>
    %c0_17 = arith.constant 0 : index
    %c0_18 = arith.constant 0 : index
    %22 = vector.load %arg8[%c0_17, %c0_18] : memref<16x128xf32, #tpu.memory_space<vmem>>, vector<16x128xf32>
    tpu.vector_store %arg8[%c0_17, %c0_18], %21 {strides = array<i32>} : memref<16x128xf32, #tpu.memory_space<vmem>>, vector<16x128xf32>,
    return
  }
  func.func @transform_0(%arg0: i32) -> (i32, i32) {
    %c0_i32 = arith.constant 0 : i32
    %c0_i32_0 = arith.constant 0 : i32
    return %arg0, %c0_i32 : i32, i32
  }
  func.func @transform_1(%arg0: i32) -> (i32, i32) {
    %c0_i32 = arith.constant 0 : i32
    %c0_i32_0 = arith.constant 0 : i32
    %c0_i32_1 = arith.constant 0 : i32
    return %c0_i32, %c0_i32_0 : i32, i32
  }
  func.func @transform_2(%arg0: i32) -> (i32, i32) {
    %c0_i32 = arith.constant 0 : i32
    %c0_i32_0 = arith.constant 0 : i32
    %c0_i32_1 = arith.constant 0 : i32
    return %c0_i32, %c0_i32_0 : i32, i32
  }
  func.func @transform_3(%arg0: i32) -> (i32, i32) {
    %c0_i32 = arith.constant 0 : i32
    %c0_i32_0 = arith.constant 0 : i32
    %c0_i32_1 = arith.constant 0 : i32
    return %c0_i32, %c0_i32_0 : i32, i32
  }
  func.func @transform_4(%arg0: i32) -> (i32, i32) {
    %c0_i32 = arith.constant 0 : i32
    %c0_i32_0 = arith.constant 0 : i32
    %c0_i32_1 = arith.constant 0 : i32
    return %c0_i32, %c0_i32_0 : i32, i32
  }
  func.func @transform_5(%arg0: i32) -> (i32, i32) {
    %c0_i32 = arith.constant 0 : i32
    %c0_i32_0 = arith.constant 0 : i32
    %c0_i32_1 = arith.constant 0 : i32
    return %c0_i32, %c0_i32_0 : i32, i32
  }
  func.func @transform_6(%arg0: i32) -> (i32, i32) {
    %c0_i32 = arith.constant 0 : i32
    %c0_i32_0 = arith.constant 0 : i32
    %c0_i32_1 = arith.constant 0 : i32
    return %c0_i32, %c0_i32_0 : i32, i32
  }
  func.func @transform_7(%arg0: i32) -> (i32, i32) {
    %c0_i32 = arith.constant 0 : i32
    %c0_i32_0 = arith.constant 0 : i32
    return %arg0, %c0_i32 : i32, i32
  }
}

</mosaic_0001>

<bundles_post_ra>
// kernel: lenet_forward.3
= control target key start
LH: loop header
LB: loop body
LE: loop exit
PB: predicated region body
PF: predicated region fallthrough
CT: control target
= control target key end

     0   :  { %s2382_s21 = smov 0   ;;  %s2921_s0 = inlined_call_operand.vmem [shape: bf16[416,128], index: 0, kind: input, shape index: {}]   ;;  %s2922_s1 = inlined_call_operand.vmem [shape: bf16[416,128], index: 1, kind: input, shape index: {}]   ;;  %s2923_s2 = inlined_call_operand.vmem [shape: bf16[416,128], index: 2, kind: input, shape index: {}]   ;;  %s2924_s3 = inlined_call_operand.vmem [shape: bf16[416,128], index: 3, kind: input, shape index: {}]   ;;  %s2925_s4 = inlined_call_operand.vmem [shape: bf16[128,128], index: 4, kind: input, shape index: {}]   ;;  %s2926_s5 = inlined_call_operand.vmem [shape: f32[1,128], index: 5, kind: input, shape index: {}]   ;;  %s2927_s6 = inlined_call_operand.vmem [shape: bf16[416,128], index: 6, kind: output, shape index: {}]  }
   0x1 LB: > { %s1709_s22 = sadd.s32 4294967295, %s2343_s21   ;;  %p1713_p0 = scmp.ge.s32.totalorder %s2343_s21, 1  ;;  %s2343_s21 = sphi %s2382_s21, %s16_s21  }
   0x2   : > { %p246_p1 = scmp.lt.s32.totalorder %s2343_s21, 3 }
   0x4   : > { %p247_p2 = pnand %p1713_p0, %p246_p1 }
   0x6   : > { %250 = sbr.rel (%p247_p2) target bundleno = 452 (0x1c4), region = 44 }
   0xb   : > { %v2277_v0 = vld [vmem:[%s2925_s4 + $0x38] sm:$0xff]   ;;  %v2345_v1 = vmov 0.0   ;;  %v2278_v2 = vld [vmem:[%s2925_s4 + $0x30] sm:$0xff]   ;;  %s291_s27 = smul.u32 26, %s1709_s22  ;;  %vm2346_vm0 = vmmov 0   ;;  %v2279_v3 = vld [vmem:[%s2925_s4 + $0x28] sm:$0xff]  }
   0xc   : > { %1995 = vmatprep.subr.bf16.mxu0 %v2345_v1  ;;  %2063 = vmatprep.subr.bf16.mxu1 %v2345_v1  ;;  %v2280_v4 = vld [vmem:[%s2925_s4 + $0x20] sm:$0xff]   ;;  %v2281_v5 = vld [vmem:[%s2925_s4 + $0x18] sm:$0xff]   ;;  %v2282_v6 = vld [vmem:[%s2925_s4 + $0x10] sm:$0xff]  }
   0xd   : > { %1996 = vmatpush3.bf16.msra.mxu0 %v2277_v0  ;;  %2064 = vmatpush3.bf16.msra.mxu1 %v2277_v0  ;;  %p292_p3 = scmp.lt.s32.totalorder %s291_s27, 51  ;;  %v2283_v7 = vld [vmem:[%s2925_s4 + $0x8] sm:$0xff]   ;;  %v2446_v8 = vld [vmem:[%s2925_s4] sm:$0xff]  }
   0xe   : > { %1997 = vmatprep.subr.bf16.mxu0 %v2345_v1  ;;  %2065 = vmatprep.subr.bf16.mxu1 %v2345_v1 }
   0xf   : > { %2011 = vmatprep.mubr.msk.bf16.mxu0 %vm2346_vm0, %v2345_v1  ;;  %2079 = vmatprep.mubr.msk.bf16.mxu1 %vm2346_vm0, %v2345_v1  ;;  %s2972_s27 = smov (!%p292_p3, %s291_s27), 51 }
  0x10   : > { %s2409_s30 = sshll.u32 %s2972_s27, 2 }
  0x11   : > { %1998 = vmatpush3.bf16.msra.mxu0 %v2278_v2  ;;  %2066 = vmatpush3.bf16.msra.mxu1 %v2278_v2  ;;  %s2415_s9 = scalar_lea.vmem %s2921_s0, %s2409_s30  ;;  %s2424_s14 = scalar_lea.vmem %s2922_s1, %s2409_s30 }
  0x12   : > { %1999 = vmatprep.subr.bf16.mxu0 %v2345_v1  ;;  %2067 = vmatprep.subr.bf16.mxu1 %v2345_v1  ;;  %v2285_v9 = vld [vmem:[%s2415_s9] sm:$0xff]   ;;  %s2464_s26 = scalar_lea.vmem %s2923_s2, %s2409_s30  ;;  %v2287_v11 = vld [vmem:[%s2415_s9 + $0x8] sm:$0xff]   ;;  %s2473_s29 = scalar_lea.vmem %s2924_s3, %s2409_s30  ;;  %v2289_v13 = vld [vmem:[%s2415_s9 + $0x10] sm:$0xff]  }
  0x13   : > { %v2286_v10 = vld [vmem:[%s2424_s14] sm:$0xff]   ;;  %v2288_v12 = vld [vmem:[%s2424_s14 + $0x8] sm:$0xff]   ;;  %v2290_v14 = vld [vmem:[%s2424_s14 + $0x10] sm:$0xff]   ;;  %s2810_s11 = scalar_lea.vmem %s2927_s6, %s2409_s30 }
  0x14   : > { %v2291_v15 = vld [vmem:[%s2415_s9 + $0x18] sm:$0xff]   ;;  %v2293_v17 = vld [vmem:[%s2415_s9 + $0x20] sm:$0xff]   ;;  %v2295_v19 = vld [vmem:[%s2415_s9 + $0x28] sm:$0xff]  }
  0x15   : > { %2000 = vmatpush3.bf16.msra.mxu0 %v2279_v3  ;;  %2068 = vmatpush3.bf16.msra.mxu1 %v2279_v3  ;;  %v2292_v16 = vld [vmem:[%s2424_s14 + $0x18] sm:$0xff]   ;;  %v2294_v18 = vld [vmem:[%s2424_s14 + $0x20] sm:$0xff]   ;;  %v2296_v20 = vld [vmem:[%s2424_s14 + $0x28] sm:$0xff]  }
  0x16   : > { %2001 = vmatprep.subr.bf16.mxu0 %v2345_v1  ;;  %2069 = vmatprep.subr.bf16.mxu1 %v2345_v1  ;;  %v2297_v21 = vld [vmem:[%s2415_s9 + $0x30] sm:$0xff]   ;;  %v2299_v23 = vld [vmem:[%s2415_s9 + $0x38] sm:$0xff]   ;;  %v2301_v25 = vld [vmem:[%s2415_s9 + $0x40] sm:$0xff]  }
  0x17   : > { %v2298_v22 = vld [vmem:[%s2424_s14 + $0x30] sm:$0xff]   ;;  %v2300_v24 = vld [vmem:[%s2424_s14 + $0x38] sm:$0xff]   ;;  %v2302_v26 = vld [vmem:[%s2424_s14 + $0x40] sm:$0xff]  }
  0x18   : > { %v2303_v27 = vld [vmem:[%s2415_s9 + $0x48] sm:$0xff]   ;;  %v2305_v29 = vld [vmem:[%s2415_s9 + $0x50] sm:$0xff]   ;;  %v2307_v31 = vld [vmem:[%s2415_s9 + $0x58] sm:$0xff]  }
  0x19   : > { %2002 = vmatpush3.bf16.msra.mxu0 %v2280_v4  ;;  %2070 = vmatpush3.bf16.msra.mxu1 %v2280_v4  ;;  %v2304_v28 = vld [vmem:[%s2424_s14 + $0x48] sm:$0xff]   ;;  %v2306_v30 = vld [vmem:[%s2424_s14 + $0x50] sm:$0xff]   ;;  %v2308_v32 = vld [vmem:[%s2424_s14 + $0x58] sm:$0xff]  }
  0x1a   : > { %2003 = vmatprep.subr.bf16.mxu0 %v2345_v1  ;;  %2071 = vmatprep.subr.bf16.mxu1 %v2345_v1  ;;  %v2309_v33 = vld [vmem:[%s2415_s9 + $0x60] sm:$0xff]   ;;  %v2313_v37 = vld [vmem:[%s2464_s26 + $0x8] sm:$0xff]   ;;  %v2315_v39 = vld [vmem:[%s2464_s26 + $0x10] sm:$0xff]  }
  0x1b   : > { %v2310_v34 = vld [vmem:[%s2424_s14 + $0x60] sm:$0xff]   ;;  %v2314_v38 = vld [vmem:[%s2473_s29 + $0x8] sm:$0xff]   ;;  %v2316_v40 = vld [vmem:[%s2473_s29 + $0x10] sm:$0xff]  }
  0x1c   : > { %v2311_v35 = vld [vmem:[%s2464_s26] sm:$0xff]   ;;  %v2317_v41 = vld [vmem:[%s2464_s26 + $0x18] sm:$0xff]   ;;  %v2321_v45 = vld [vmem:[%s2464_s26 + $0x28] sm:$0xff]  }
  0x1d   : > { %2004 = vmatpush3.bf16.msra.mxu0 %v2281_v5  ;;  %2072 = vmatpush3.bf16.msra.mxu1 %v2281_v5  ;;  %v2312_v36 = vld [vmem:[%s2473_s29] sm:$0xff]   ;;  %v2318_v42 = vld [vmem:[%s2473_s29 + $0x18] sm:$0xff]   ;;  %v2322_v46 = vld [vmem:[%s2473_s29 + $0x28] sm:$0xff]  }
  0x1e   : > { %2005 = vmatprep.subr.bf16.mxu0 %v2345_v1  ;;  %2073 = vmatprep.subr.bf16.mxu1 %v2345_v1  ;;  %v2319_v43 = vld [vmem:[%s2464_s26 + $0x20] sm:$0xff]   ;;  %v2323_v47 = vld [vmem:[%s2464_s26 + $0x30] sm:$0xff]   ;;  %v2325_v49 = vld [vmem:[%s2464_s26 + $0x38] sm:$0xff]  }
  0x1f   : > { %v2320_v44 = vld [vmem:[%s2473_s29 + $0x20] sm:$0xff]   ;;  %v2324_v48 = vld [vmem:[%s2473_s29 + $0x30] sm:$0xff]   ;;  %v2326_v50 = vld [vmem:[%s2473_s29 + $0x38] sm:$0xff]  }
  0x20   : > { %v2327_v51 = vld [vmem:[%s2464_s26 + $0x40] sm:$0xff]   ;;  %v2329_v53 = vld [vmem:[%s2464_s26 + $0x48] sm:$0xff]   ;;  %v2331_v55 = vld [vmem:[%s2464_s26 + $0x50] sm:$0xff]  }
  0x21   : > { %2006 = vmatpush3.bf16.msra.mxu0 %v2282_v6  ;;  %2074 = vmatpush3.bf16.msra.mxu1 %v2282_v6  ;;  %v2328_v52 = vld [vmem:[%s2473_s29 + $0x40] sm:$0xff]   ;;  %v2330_v54 = vld [vmem:[%s2473_s29 + $0x48] sm:$0xff]   ;;  %v2332_v56 = vld [vmem:[%s2473_s29 + $0x50] sm:$0xff]  }
  0x22   : > { %2007 = vmatprep.subr.bf16.mxu0 %v2345_v1  ;;  %2075 = vmatprep.subr.bf16.mxu1 %v2345_v1  ;;  %v2333_v57 = vld [vmem:[%s2464_s26 + $0x58] sm:$0xff]  }
  0x23   : > { %v2334_v58 = vld [vmem:[%s2473_s29 + $0x58] sm:$0xff]  }
  0x25   : > { %2008 = vmatpush3.bf16.msra.mxu0 %v2283_v7  ;;  %2076 = vmatpush3.bf16.msra.mxu1 %v2283_v7 }
  0x26   : > { %2009 = vmatprep.subr.bf16.mxu0 %v2345_v1  ;;  %2077 = vmatprep.subr.bf16.mxu1 %v2345_v1 }
  0x29   : > { %2010 = vmatpush3.bf16.msra.mxu0 %v2446_v8  ;;  %2078 = vmatpush3.bf16.msra.mxu1 %v2446_v8 }
  0x2a   : > { %2131 = vmatprep.subr.bf16.mxu0 %v2345_v1  ;;  %2199 = vmatprep.subr.bf16.mxu1 %v2345_v1 }
  0x2c   : > { %2012 = vmatmul.mubr.bf16.vlgmr.msra.gmra.mxu0 %v2285_v9  ;;  %2080 = vmatmul.mubr.bf16.vlgmr.msra.gmra.mxu1 %v2286_v10 }
  0x2d   : > { %2132 = vmatpush3.bf16.msra.mxu0 %v2277_v0  ;;  %2200 = vmatpush3.bf16.msra.mxu1 %v2277_v0 }
  0x2e   : > { %2015 = vmatprep.mubr.msk.bf16.mxu0 %vm2346_vm0, %v2345_v1  ;;  %2083 = vmatprep.mubr.msk.bf16.mxu1 %vm2346_vm0, %v2345_v1 }
  0x2f   : > { %2133 = vmatprep.subr.bf16.mxu0 %v2345_v1  ;;  %2201 = vmatprep.subr.bf16.mxu1 %v2345_v1 }
  0x31   : > { %2134 = vmatpush3.bf16.msra.mxu0 %v2278_v2  ;;  %2202 = vmatpush3.bf16.msra.mxu1 %v2278_v2 }
  0x32   : > { %2135 = vmatprep.subr.bf16.mxu0 %v2345_v1  ;;  %2203 = vmatprep.subr.bf16.mxu1 %v2345_v1 }
  0x34   : > { %2016 = vmatmul.mubr.bf16.gmra.mxu0 %v2287_v11  ;;  %2084 = vmatmul.mubr.bf16.gmra.mxu1 %v2288_v12 }
  0x35   : > { %2019 = vmatprep.mubr.msk.bf16.mxu0 %vm2346_vm0, %v2345_v1  ;;  %2087 = vmatprep.mubr.msk.bf16.mxu1 %vm2346_vm0, %v2345_v1 }
  0x36   : > { %2136 = vmatpush3.bf16.msra.mxu0 %v2279_v3  ;;  %2204 = vmatpush3.bf16.msra.mxu1 %v2279_v3  ;;  %v2335_v3 = vld [vmem:[%s2464_s26 + $0x60] sm:$0xff]  }
  0x37   : > { %2137 = vmatprep.subr.bf16.mxu0 %v2345_v1  ;;  %2205 = vmatprep.subr.bf16.mxu1 %v2345_v1 }
  0x3a   : > { %2138 = vmatpush3.bf16.msra.mxu0 %v2280_v4  ;;  %2206 = vmatpush3.bf16.msra.mxu1 %v2280_v4  ;;  %v2336_v4 = vld [vmem:[%s2473_s29 + $0x60] sm:$0xff]  }
  0x3b   : > { %2139 = vmatprep.subr.bf16.mxu0 %v2345_v1  ;;  %2207 = vmatprep.subr.bf16.mxu1 %v2345_v1 }
  0x3c   : > { %2020 = vmatmul.mubr.bf16.gmra.mxu0 %v2289_v13  ;;  %2088 = vmatmul.mubr.bf16.gmra.mxu1 %v2290_v14 }
  0x3d   : > { %2023 = vmatprep.mubr.msk.bf16.mxu0 %vm2346_vm0, %v2345_v1  ;;  %2091 = vmatprep.mubr.msk.bf16.mxu1 %vm2346_vm0, %v2345_v1 }
  0x3e   : > { %2140 = vmatpush3.bf16.msra.mxu0 %v2281_v5  ;;  %2208 = vmatpush3.bf16.msra.mxu1 %v2281_v5 }
  0x3f   : > { %2141 = vmatprep.subr.bf16.mxu0 %v2345_v1  ;;  %2209 = vmatprep.subr.bf16.mxu1 %v2345_v1 }
  0x42   : > { %2142 = vmatpush3.bf16.msra.mxu0 %v2282_v6  ;;  %2210 = vmatpush3.bf16.msra.mxu1 %v2282_v6 }
  0x43   : > { %2143 = vmatprep.subr.bf16.mxu0 %v2345_v1  ;;  %2211 = vmatprep.subr.bf16.mxu1 %v2345_v1 }
  0x44   : > { %2024 = vmatmul.mubr.bf16.gmra.mxu0 %v2291_v15  ;;  %2092 = vmatmul.mubr.bf16.gmra.mxu1 %v2292_v16 }
  0x45   : > { %2027 = vmatprep.mubr.msk.bf16.mxu0 %vm2346_vm0, %v2345_v1  ;;  %2095 = vmatprep.mubr.msk.bf16.mxu1 %vm2346_vm0, %v2345_v1 }
  0x46   : > { %2144 = vmatpush3.bf16.msra.mxu0 %v2283_v7  ;;  %2212 = vmatpush3.bf16.msra.mxu1 %v2283_v7 }
  0x47   : > { %2145 = vmatprep.subr.bf16.mxu0 %v2345_v1  ;;  %2213 = vmatprep.subr.bf16.mxu1 %v2345_v1 }
  0x4a   : > { %2146 = vmatpush3.bf16.msra.mxu0 %v2446_v8  ;;  %2214 = vmatpush3.bf16.msra.mxu1 %v2446_v8 }
  0x4c   : > { %2028 = vmatmul.mubr.bf16.gmra.mxu0 %v2293_v17  ;;  %2096 = vmatmul.mubr.bf16.gmra.mxu1 %v2294_v18 }
  0x4d   : > { %2031 = vmatprep.mubr.msk.bf16.mxu0 %vm2346_vm0, %v2345_v1  ;;  %2099 = vmatprep.mubr.msk.bf16.mxu1 %vm2346_vm0, %v2345_v1 }
  0x54   : > { %2032 = vmatmul.mubr.bf16.gmra.mxu0 %v2295_v19  ;;  %2100 = vmatmul.mubr.bf16.gmra.mxu1 %v2296_v20 }
  0x55   : > { %2035 = vmatprep.mubr.msk.bf16.mxu0 %vm2346_vm0, %v2345_v1  ;;  %2103 = vmatprep.mubr.msk.bf16.mxu1 %vm2346_vm0, %v2345_v1 }
  0x5c   : > { %2036 = vmatmul.mubr.bf16.gmra.mxu0 %v2297_v21  ;;  %2104 = vmatmul.mubr.bf16.gmra.mxu1 %v2298_v22 }
  0x5d   : > { %2039 = vmatprep.mubr.msk.bf16.mxu0 %vm2346_vm0, %v2345_v1  ;;  %2107 = vmatprep.mubr.msk.bf16.mxu1 %vm2346_vm0, %v2345_v1 }
  0x64   : > { %2040 = vmatmul.mubr.bf16.gmra.mxu0 %v2299_v23  ;;  %2108 = vmatmul.mubr.bf16.gmra.mxu1 %v2300_v24 }
  0x65   : > { %2043 = vmatprep.mubr.msk.bf16.mxu0 %vm2346_vm0, %v2345_v1  ;;  %2111 = vmatprep.mubr.msk.bf16.mxu1 %vm2346_vm0, %v2345_v1 }
  0x6c   : > { %2044 = vmatmul.mubr.bf16.gmra.mxu0 %v2301_v25  ;;  %2112 = vmatmul.mubr.bf16.gmra.mxu1 %v2302_v26 }
  0x6d   : > { %2047 = vmatprep.mubr.msk.bf16.mxu0 %vm2346_vm0, %v2345_v1  ;;  %2115 = vmatprep.mubr.msk.bf16.mxu1 %vm2346_vm0, %v2345_v1 }
  0x74   : > { %2048 = vmatmul.mubr.bf16.gmra.mxu0 %v2303_v27  ;;  %2116 = vmatmul.mubr.bf16.gmra.mxu1 %v2304_v28 }
  0x75   : > { %2051 = vmatprep.mubr.msk.bf16.mxu0 %vm2346_vm0, %v2345_v1  ;;  %2119 = vmatprep.mubr.msk.bf16.mxu1 %vm2346_vm0, %v2345_v1 }
  0x7c   : > { %2052 = vmatmul.mubr.bf16.gmra.mxu0 %v2305_v29  ;;  %2120 = vmatmul.mubr.bf16.gmra.mxu1 %v2306_v30 }
  0x7d   : > { %2055 = vmatprep.mubr.msk.bf16.mxu0 %vm2346_vm0, %v2345_v1  ;;  %2123 = vmatprep.mubr.msk.bf16.mxu1 %vm2346_vm0, %v2345_v1 }
  0x84   : > { %2056 = vmatmul.mubr.bf16.gmra.mxu0 %v2307_v31  ;;  %2124 = vmatmul.mubr.bf16.gmra.mxu1 %v2308_v32 }
  0x85   : > { %2059 = vmatprep.mubr.msk.bf16.mxu0 %vm2346_vm0, %v2345_v1  ;;  %2127 = vmatprep.mubr.msk.bf16.mxu1 %vm2346_vm0, %v2345_v1 }
  0x8c   : > { %2060 = vmatmul.mubr.bf16.gmra.mxu0 %v2309_v33  ;;  %2128 = vmatmul.mubr.bf16.gmra.mxu1 %v2310_v34 }
  0x8d   : > { %2147 = vmatprep.mubr.msk.bf16.mxu0 %vm2346_vm0, %v2345_v1  ;;  %2215 = vmatprep.mubr.msk.bf16.mxu1 %vm2346_vm0, %v2345_v1 }
  0x94   : > { %2148 = vmatmul.mubr.bf16.vlgmr.msra.gmra.mxu0 %v2311_v35  ;;  %2216 = vmatmul.mubr.bf16.vlgmr.msra.gmra.mxu1 %v2312_v36 }
  0x95   : > { %2151 = vmatprep.mubr.msk.bf16.mxu0 %vm2346_vm0, %v2345_v1  ;;  %2219 = vmatprep.mubr.msk.bf16.mxu1 %vm2346_vm0, %v2345_v1 }
  0x9c   : > { %2152 = vmatmul.mubr.bf16.gmra.mxu0 %v2313_v37  ;;  %2220 = vmatmul.mubr.bf16.gmra.mxu1 %v2314_v38 }
  0x9d   : > { %2155 = vmatprep.mubr.msk.bf16.mxu0 %vm2346_vm0, %v2345_v1  ;;  %2223 = vmatprep.mubr.msk.bf16.mxu1 %vm2346_vm0, %v2345_v1 }
  0xa4   : > { %2156 = vmatmul.mubr.bf16.gmra.mxu0 %v2315_v39  ;;  %2224 = vmatmul.mubr.bf16.gmra.mxu1 %v2316_v40 }
  0xa5   : > { %2159 = vmatprep.mubr.msk.bf16.mxu0 %vm2346_vm0, %v2345_v1  ;;  %2227 = vmatprep.mubr.msk.bf16.mxu1 %vm2346_vm0, %v2345_v1 }
  0xac   : > { %2160 = vmatmul.mubr.bf16.gmra.mxu0 %v2317_v41  ;;  %2228 = vmatmul.mubr.bf16.gmra.mxu1 %v2318_v42 }
  0xad   : > { %2163 = vmatprep.mubr.msk.bf16.mxu0 %vm2346_vm0, %v2345_v1  ;;  %2231 = vmatprep.mubr.msk.bf16.mxu1 %vm2346_vm0, %v2345_v1 }
  0xb4   : > { %2164 = vmatmul.mubr.bf16.gmra.mxu0 %v2319_v43  ;;  %2232 = vmatmul.mubr.bf16.gmra.mxu1 %v2320_v44 }
  0xb5   : > { %2167 = vmatprep.mubr.msk.bf16.mxu0 %vm2346_vm0, %v2345_v1  ;;  %2235 = vmatprep.mubr.msk.bf16.mxu1 %vm2346_vm0, %v2345_v1 }
  0xbc   : > { %2168 = vmatmul.mubr.bf16.gmra.mxu0 %v2321_v45  ;;  %2236 = vmatmul.mubr.bf16.gmra.mxu1 %v2322_v46 }
  0xbd   : > { %2171 = vmatprep.mubr.msk.bf16.mxu0 %vm2346_vm0, %v2345_v1  ;;  %2239 = vmatprep.mubr.msk.bf16.mxu1 %vm2346_vm0, %v2345_v1 }
  0xc4   : > { %2172 = vmatmul.mubr.bf16.gmra.mxu0 %v2323_v47  ;;  %2240 = vmatmul.mubr.bf16.gmra.mxu1 %v2324_v48 }
  0xc5   : > { %2175 = vmatprep.mubr.msk.bf16.mxu0 %vm2346_vm0, %v2345_v1  ;;  %2243 = vmatprep.mubr.msk.bf16.mxu1 %vm2346_vm0, %v2345_v1 }
  0xcc   : > { %2176 = vmatmul.mubr.bf16.gmra.mxu0 %v2325_v49  ;;  %2244 = vmatmul.mubr.bf16.gmra.mxu1 %v2326_v50 }
  0xcd   : > { %2179 = vmatprep.mubr.msk.bf16.mxu0 %vm2346_vm0, %v2345_v1  ;;  %2247 = vmatprep.mubr.msk.bf16.mxu1 %vm2346_vm0, %v2345_v1 }
  0xd4   : > { %2180 = vmatmul.mubr.bf16.gmra.mxu0 %v2327_v51  ;;  %2248 = vmatmul.mubr.bf16.gmra.mxu1 %v2328_v52 }
  0xd5   : > { %2183 = vmatprep.mubr.msk.bf16.mxu0 %vm2346_vm0, %v2345_v1  ;;  %2251 = vmatprep.mubr.msk.bf16.mxu1 %vm2346_vm0, %v2345_v1 }
  0xdc   : > { %2184 = vmatmul.mubr.bf16.gmra.mxu0 %v2329_v53  ;;  %2252 = vmatmul.mubr.bf16.gmra.mxu1 %v2330_v54 }
  0xdd   : > { %2187 = vmatprep.mubr.msk.bf16.mxu0 %vm2346_vm0, %v2345_v1  ;;  %2255 = vmatprep.mubr.msk.bf16.mxu1 %vm2346_vm0, %v2345_v1 }
  0xe4   : > { %2188 = vmatmul.mubr.bf16.gmra.mxu0 %v2331_v55  ;;  %2256 = vmatmul.mubr.bf16.gmra.mxu1 %v2332_v56 }
  0xe5   : > { %2191 = vmatprep.mubr.msk.bf16.mxu0 %vm2346_vm0, %v2345_v1  ;;  %2259 = vmatprep.mubr.msk.bf16.mxu1 %vm2346_vm0, %v2345_v1 }
  0xec   : > { %v2628_v59 = vpop.f32.mrf.mxu0  ;;  %v2630_v60 = vpop.f32.mrf.mxu1  ;;  %2192 = vmatmul.mubr.bf16.gmra.mxu0 %v2333_v57  ;;  %2260 = vmatmul.mubr.bf16.gmra.mxu1 %v2334_v58 }
  0xed   : > { %v868_v61 = vmax.f32 %v2628_v59, %v2630_v60  ;;  %2195 = vmatprep.mubr.msk.bf16.mxu0 %vm2346_vm0, %v2345_v1  ;;  %2263 = vmatprep.mubr.msk.bf16.mxu1 %vm2346_vm0, %v2345_v1 }
  0xee   : > { %v2013_v62 = vpop.f32.mrf.mxu0  ;;  %v2081_v63 = vpop.f32.mrf.mxu1 }
  0xf0   : > { %v2638_v0 = vpop.f32.mrf.mxu0  ;;  %v2640_v2 = vpop.f32.mrf.mxu1 }
  0xf2   : > { %v2014_v6 = vpop.f32.mrf.mxu0  ;;  %v2082_v7 = vpop.f32.mrf.mxu1 }
  0xf4   : > { %v2646_v8 = vpop.f32.mrf.mxu0  ;;  %v2648_v9 = vpop.f32.mrf.mxu1  ;;  %2196 = vmatmul.mubr.bf16.gmra.mxu0 %v2335_v3  ;;  %2264 = vmatmul.mubr.bf16.gmra.mxu1 %v2336_v4 }
  0xf6   : > { %v2017_v10 = vpop.f32.mrf.mxu0  ;;  %v2085_v11 = vpop.f32.mrf.mxu1 }
  0xf8   : > { %v2652_v12 = vpop.f32.mrf.mxu0  ;;  %v2654_v13 = vpop.f32.mrf.mxu1 }
  0xfa   : > { %v2018_v15 = vpop.f32.mrf.mxu0  ;;  %v2086_v16 = vpop.f32.mrf.mxu1 }
  0xfc   : > { %v2658_v17 = vpop.f32.mrf.mxu0  ;;  %v2660_v18 = vpop.f32.mrf.mxu1 }
  0xfe   : > { %v2021_v20 = vpop.f32.mrf.mxu0  ;;  %v2089_v21 = vpop.f32.mrf.mxu1 }
 0x100   : > { %v2664_v22 = vpop.f32.mrf.mxu0  ;;  %v2666_v23 = vpop.f32.mrf.mxu1 }
 0x102   : > { %v2022_v25 = vpop.f32.mrf.mxu0  ;;  %v2090_v26 = vpop.f32.mrf.mxu1 }
 0x104   : > { %v2670_v27 = vpop.f32.mrf.mxu0  ;;  %v2672_v28 = vpop.f32.mrf.mxu1 }
 0x106   : > { %v2025_v30 = vpop.f32.mrf.mxu0  ;;  %v2093_v31 = vpop.f32.mrf.mxu1 }
 0x108   : > { %v2676_v32 = vpop.f32.mrf.mxu0  ;;  %v2678_v33 = vpop.f32.mrf.mxu1 }
 0x10a   : > { %v2026_v35 = vpop.f32.mrf.mxu0  ;;  %v2094_v36 = vpop.f32.mrf.mxu1 }
 0x10c   : > { %v2682_v37 = vpop.f32.mrf.mxu0  ;;  %v2684_v38 = vpop.f32.mrf.mxu1 }
 0x10e   : > { %v2029_v40 = vpop.f32.mrf.mxu0  ;;  %v2097_v41 = vpop.f32.mrf.mxu1 }
 0x110   : > { %v2688_v42 = vpop.f32.mrf.mxu0  ;;  %v2690_v43 = vpop.f32.mrf.mxu1 }
 0x112   : > { %v2030_v45 = vpop.f32.mrf.mxu0  ;;  %v2098_v46 = vpop.f32.mrf.mxu1 }
 0x114   : > { %v2694_v47 = vpop.f32.mrf.mxu0  ;;  %v2696_v48 = vpop.f32.mrf.mxu1 }
 0x116   : > { %v2033_v50 = vpop.f32.mrf.mxu0  ;;  %v2101_v51 = vpop.f32.mrf.mxu1 }
 0x118   : > { %v2700_v52 = vpop.f32.mrf.mxu0  ;;  %v2702_v53 = vpop.f32.mrf.mxu1 }
 0x11a   : > { %v2034_v55 = vpop.f32.mrf.mxu0  ;;  %v2102_v56 = vpop.f32.mrf.mxu1 }
 0x11c   : > { %v2706_v57 = vpop.f32.mrf.mxu0  ;;  %v2708_v58 = vpop.f32.mrf.mxu1 }
 0x11e   : > { %v2037_v63 = vpop.f32.mrf.mxu0  ;;  %v2105_v3 = vpop.f32.mrf.mxu1 }
 0x120   : > { %v2712_v4 = vpop.f32.mrf.mxu0  ;;  %v2714_v6 = vpop.f32.mrf.mxu1 }
 0x122   : > { %v2038_v10 = vpop.f32.mrf.mxu0  ;;  %v2106_v11 = vpop.f32.mrf.mxu1 }
 0x124   : > { %v2718_v15 = vpop.f32.mrf.mxu0  ;;  %v2720_v16 = vpop.f32.mrf.mxu1 }
 0x126   : > { %v2041_v21 = vpop.f32.mrf.mxu0  ;;  %v2109_v25 = vpop.f32.mrf.mxu1 }
 0x128   : > { %v2724_v26 = vpop.f32.mrf.mxu0  ;;  %v2726_v30 = vpop.f32.mrf.mxu1 }
 0x12a   : > { %v2042_v35 = vpop.f32.mrf.mxu0  ;;  %v2110_v36 = vpop.f32.mrf.mxu1 }
 0x12c   : > { %v2730_v40 = vpop.f32.mrf.mxu0  ;;  %v2732_v41 = vpop.f32.mrf.mxu1 }
 0x12e   : > { %v2045_v46 = vpop.f32.mrf.mxu0  ;;  %v2113_v50 = vpop.f32.mrf.mxu1 }
 0x130   : > { %v2736_v51 = vpop.f32.mrf.mxu0  ;;  %v2738_v55 = vpop.f32.mrf.mxu1 }
 0x132   : > { %v2046_v63 = vpop.f32.mrf.mxu0  ;;  %v2114_v3 = vpop.f32.mrf.mxu1 }
 0x134   : > { %v2742_v10 = vpop.f32.mrf.mxu0  ;;  %v2744_v11 = vpop.f32.mrf.mxu1 }
 0x136   : > { %v2049_v25 = vpop.f32.mrf.mxu0  ;;  %v2117_v35 = vpop.f32.mrf.mxu1 }
 0x138   : > { %v2748_v36 = vpop.f32.mrf.mxu0  ;;  %v2750_v46 = vpop.f32.mrf.mxu1 }
 0x13a   : > { %v2050_v45 = vpop.f32.mrf.mxu0  ;;  %v2118_v56 = vpop.f32.mrf.mxu1 }
 0x13c   : > { %v2754_v63 = vpop.f32.mrf.mxu0  ;;  %v2756_v3 = vpop.f32.mrf.mxu1 }
 0x13e   : > { %v2053_v20 = vpop.f32.mrf.mxu0  ;;  %v2121_v21 = vpop.f32.mrf.mxu1 }
 0x140   : > { %v2760_v25 = vpop.f32.mrf.mxu0  ;;  %v2762_v35 = vpop.f32.mrf.mxu1 }
 0x142   : > { %v2054_v62 = vpop.f32.mrf.mxu0  ;;  %v2122_v50 = vpop.f32.mrf.mxu1 }
 0x144   : > { %v2766_v45 = vpop.f32.mrf.mxu0  ;;  %v2768_v56 = vpop.f32.mrf.mxu1 }
 0x146   : > { %v2057_v49 = vpop.f32.mrf.mxu0  ;;  %v2125_v31 = vpop.f32.mrf.mxu1 }
 0x148   : > { %v2772_v20 = vpop.f32.mrf.mxu0  ;;  %v2774_v21 = vpop.f32.mrf.mxu1 }
 0x149   : > { %2934 = vst [vmem:[#allocation2_spill] sm:$0xff] %v2772_v20  ;;  %2935 = vst [vmem:[#allocation3_spill] sm:$0xff] %v2774_v21 }
 0x14a   : > { %v2058_v39 = vpop.f32.mrf.mxu0  ;;  %v2126_v7 = vpop.f32.mrf.mxu1 }
 0x14c   : > { %v2778_v62 = vpop.f32.mrf.mxu0  ;;  %v2780_v50 = vpop.f32.mrf.mxu1 }
 0x14d   : > { %2936 = vst [vmem:[#allocation4_spill] sm:$0xff] %v2778_v62  ;;  %2937 = vst [vmem:[#allocation5_spill] sm:$0xff] %v2780_v50 }
 0x14e   : > { %v2061_v29 = vpop.f32.mrf.mxu0  ;;  %v2129_v54 = vpop.f32.mrf.mxu1 }
 0x14f   : > { %v2796_v29 = vld [vmem:[%s2926_s5] ss:$0 sm:$0xff] }
 0x150   : > { %v2784_v49 = vpop.f32.mrf.mxu0  ;;  %v2786_v31 = vpop.f32.mrf.mxu1 }
 0x151   : > { %2938 = vst [vmem:[#allocation6_spill] sm:$0xff] %v2784_v49  ;;  %2939 = vst [vmem:[#allocation7_spill] sm:$0xff] %v2786_v31 }
 0x152   : > { %v2062_v19 = vpop.f32.mrf.mxu0  ;;  %v2130_v44 = vpop.f32.mrf.mxu1 }
 0x153   : > { %v2940_v19 = vmax.f32 %v2638_v0, %v2640_v2 }
 0x154   : > { %v1032_v39 = vpop.f32.mrf.mxu0  ;;  %v1299_v7 = vpop.f32.mrf.mxu1 }
 0x155   : > { %v1135_v14 = vmax.f32 %v868_v61, %v1032_v39 }
 0x156   : > { %v2149_v1 = vpop.f32.mrf.mxu0  ;;  %v2217_v5 = vpop.f32.mrf.mxu1 }
 0x157   : > { %v1402_v34 = vmax.f32 %v1135_v14, %v1299_v7  ;;  %v2941_v14 = vmax.f32 %v2646_v8, %v2648_v9 }
 0x158   : > { %v1035_v54 = vpop.f32.mrf.mxu0  ;;  %v1302_v50 = vpop.f32.mrf.mxu1 }
 0x159   : > { %v1136_v44 = vmax.f32 %v2940_v19, %v1035_v54  ;;  %v1435_v59 = vadd.f32 %v2796_v29, %v1402_v34  ;;  %v2942_v34 = vmax.f32 %v2652_v12, %v2654_v13 }
 0x15a   : > { %v2150_v24 = vpop.f32.mrf.mxu0  ;;  %v2218_v31 = vpop.f32.mrf.mxu1 }
 0x15b   : > { %v1403_v60 = vmax.f32 %v1136_v44, %v1302_v50  ;;  %v1461_v62 = vmax.f32 %v1435_v59, 0.0  ;;  %v2943_v59 = vmax.f32 %v2658_v17, %v2660_v18 }
 0x15c   : > { %v1040_v61 = vpop.f32.mrf.mxu0  ;;  %v1307_v5 = vpop.f32.mrf.mxu1 }
 0x15d   : > { %v1436_v1 = vadd.f32 %v2796_v29, %v1403_v60  ;;  %v1137_v39 = vmax.f32 %v2941_v14, %v1040_v61 }
 0x15e   : > { %v2153_v7 = vpop.f32.mrf.mxu0  ;;  %v2221_v49 = vpop.f32.mrf.mxu1 }
 0x15f   : > { %v1462_v21 = vmax.f32 %v1436_v1, 0.0  ;;  %v1404_v20 = vmax.f32 %v1137_v39, %v1307_v5 }
 0x160   : > { %v1043_v0 = vpop.f32.mrf.mxu0  ;;  %v1310_v2 = vpop.f32.mrf.mxu1 }
 0x161   : > { %v1837_v24 = vpack.c.bf16 %v1462_v21, %v1461_v62  ;;  %v1138_v50 = vmax.f32 %v2942_v34, %v1043_v0  ;;  %v1437_v49 = vadd.f32 %v2796_v29, %v1404_v20  ;;  %v2944_v20 = vmax.f32 %v2664_v22, %v2666_v23 }
 0x162   : > { %v2154_v8 = vpop.f32.mrf.mxu0  ;;  %v2222_v9 = vpop.f32.mrf.mxu1 }
 0x163   : > { %1838 = vst [vmem:[%s2810_s11] sm:$0xff] %v1837_v24   ;;  %v1405_v31 = vmax.f32 %v1138_v50, %v1310_v2  ;;  %v1463_v61 = vmax.f32 %v1437_v49, 0.0  ;;  %v2945_v50 = vmax.f32 %v2670_v27, %v2672_v28 }
 0x164   : > { %v1048_v54 = vpop.f32.mrf.mxu0  ;;  %v1315_v19 = vpop.f32.mrf.mxu1 }
 0x165   : > { %v1438_v44 = vadd.f32 %v2796_v29, %v1405_v31  ;;  %v1139_v60 = vmax.f32 %v2943_v59, %v1048_v54  ;;  %v2946_v59 = vmax.f32 %v2676_v32, %v2678_v33 }
 0x166   : > { %v2157_v21 = vpop.f32.mrf.mxu0  ;;  %v2225_v62 = vpop.f32.mrf.mxu1 }
 0x167   : > { %v1464_v12 = vmax.f32 %v1438_v44, 0.0  ;;  %v1406_v13 = vmax.f32 %v1139_v60, %v1315_v19 }
 0x168   : > { %v1051_v5 = vpop.f32.mrf.mxu0  ;;  %v1318_v1 = vpop.f32.mrf.mxu1 }
 0x169   : > { %v1842_v14 = vpack.c.bf16 %v1464_v12, %v1463_v61  ;;  %v1140_v39 = vmax.f32 %v2944_v20, %v1051_v5  ;;  %v1439_v2 = vadd.f32 %v2796_v29, %v1406_v13  ;;  %v2947_v5 = vmax.f32 %v2682_v37, %v2684_v38 }
 0x16a   : > { %v2158_v7 = vpop.f32.mrf.mxu0  ;;  %v2226_v0 = vpop.f32.mrf.mxu1 }
 0x16b   : > { %1899 = vst [vmem:[%s2810_s11 + $0x8] sm:$0xff] %v1842_v14   ;;  %v1407_v24 = vmax.f32 %v1140_v39, %v1318_v1  ;;  %v1465_v31 = vmax.f32 %v1439_v2, 0.0 }
 0x16c   : > { %v1056_v17 = vpop.f32.mrf.mxu0  ;;  %v1323_v18 = vpop.f32.mrf.mxu1 }
 0x16d   : > { %v1440_v34 = vadd.f32 %v2796_v29, %v1407_v24  ;;  %v1141_v8 = vmax.f32 %v2945_v50, %v1056_v17  ;;  %v2948_v24 = vmax.f32 %v2688_v42, %v2690_v43 }
 0x16e   : > { %v2161_v9 = vpop.f32.mrf.mxu0  ;;  %v2229_v49 = vpop.f32.mrf.mxu1 }
 0x16f   : > { %v1466_v22 = vmax.f32 %v1440_v34, 0.0  ;;  %v1408_v23 = vmax.f32 %v1141_v8, %v1323_v18  ;;  %v2949_v49 = vmax.f32 %v2694_v47, %v2696_v48 }
 0x170   : > { %v1059_v54 = vpop.f32.mrf.mxu0  ;;  %v1326_v19 = vpop.f32.mrf.mxu1 }
 0x171   : > { %v1847_v44 = vpack.c.bf16 %v1466_v22, %v1465_v31  ;;  %v1142_v60 = vmax.f32 %v2946_v59, %v1059_v54  ;;  %v1441_v61 = vadd.f32 %v2796_v29, %v1408_v23 }
 0x172   : > { %v2162_v21 = vpop.f32.mrf.mxu0  ;;  %v2230_v62 = vpop.f32.mrf.mxu1 }
 0x173   : > { %1900 = vst [vmem:[%s2810_s11 + $0x10] sm:$0xff] %v1847_v44   ;;  %v1409_v12 = vmax.f32 %v1142_v60, %v1326_v19  ;;  %v1467_v39 = vmax.f32 %v1441_v61, 0.0  ;;  %v2950_v60 = vmax.f32 %v2700_v52, %v2702_v53 }
 0x174   : > { %v1064_v27 = vpop.f32.mrf.mxu0  ;;  %v1331_v28 = vpop.f32.mrf.mxu1 }
 0x175   : > { %v1442_v13 = vadd.f32 %v2796_v29, %v1409_v12  ;;  %v1143_v1 = vmax.f32 %v2947_v5, %v1064_v27 }
 0x176   : > { %v2165_v14 = vpop.f32.mrf.mxu0  ;;  %v2233_v20 = vpop.f32.mrf.mxu1 }
 0x177   : > { %v1468_v32 = vmax.f32 %v1442_v13, 0.0  ;;  %v1410_v33 = vmax.f32 %v1143_v1, %v1331_v28  ;;  %v2951_v13 = vmax.f32 %v2706_v57, %v2708_v58 }
 0x178   : > { %v1067_v7 = vpop.f32.mrf.mxu0  ;;  %v1334_v0 = vpop.f32.mrf.mxu1 }
 0x179   : > { %v1852_v2 = vpack.c.bf16 %v1468_v32, %v1467_v39  ;;  %v1144_v17 = vmax.f32 %v2948_v24, %v1067_v7  ;;  %v1443_v50 = vadd.f32 %v2796_v29, %v1410_v33  ;;  %v2952_v7 = vmax.f32 %v2712_v4, %v2714_v6 }
 0x17a   : > { %v2166_v18 = vpop.f32.mrf.mxu0  ;;  %v2234_v34 = vpop.f32.mrf.mxu1 }
 0x17b   : > { %1901 = vst [vmem:[%s2810_s11 + $0x18] sm:$0xff] %v1852_v2   ;;  %v1411_v8 = vmax.f32 %v1144_v17, %v1334_v0  ;;  %v1469_v54 = vmax.f32 %v1443_v50, 0.0  ;;  %v2953_v50 = vmax.f32 %v2718_v15, %v2720_v16 }
 0x17c   : > { %v1072_v37 = vpop.f32.mrf.mxu0  ;;  %v1339_v38 = vpop.f32.mrf.mxu1 }
 0x17d   : > { %v1444_v9 = vadd.f32 %v2796_v29, %v1411_v8  ;;  %v1145_v31 = vmax.f32 %v2949_v49, %v1072_v37 }
 0x17e   : > { %v2169_v22 = vpop.f32.mrf.mxu0  ;;  %v2237_v23 = vpop.f32.mrf.mxu1 }
 0x17f   : > { %v1470_v42 = vmax.f32 %v1444_v9, 0.0  ;;  %v1412_v43 = vmax.f32 %v1145_v31, %v1339_v38  ;;  %v2954_v23 = vmax.f32 %v2724_v26, %v2726_v30 }
 0x180   : > { %v1075_v19 = vpop.f32.mrf.mxu0  ;;  %v1342_v44 = vpop.f32.mrf.mxu1 }
 0x181   : > { %v1857_v59 = vpack.c.bf16 %v1470_v42, %v1469_v54  ;;  %v1146_v21 = vmax.f32 %v2950_v60, %v1075_v19  ;;  %v1445_v12 = vadd.f32 %v2796_v29, %v1412_v43  ;;  %v2955_v60 = vmax.f32 %v2730_v40, %v2732_v41 }
 0x182   : > { %v2170_v62 = vpop.f32.mrf.mxu0  ;;  %v2238_v61 = vpop.f32.mrf.mxu1 }
 0x183   : > { %1902 = vst [vmem:[%s2810_s11 + $0x20] sm:$0xff] %v1857_v59   ;;  %v1413_v27 = vmax.f32 %v1146_v21, %v1342_v44  ;;  %v1471_v20 = vmax.f32 %v1445_v12, 0.0 }
 0x184   : > { %v1080_v47 = vpop.f32.mrf.mxu0  ;;  %v1347_v48 = vpop.f32.mrf.mxu1 }
 0x185   : > { %v1446_v28 = vadd.f32 %v2796_v29, %v1413_v27  ;;  %v1147_v5 = vmax.f32 %v2951_v13, %v1080_v47 }
 0x186   : > { %v2173_v1 = vpop.f32.mrf.mxu0  ;;  %v2241_v14 = vpop.f32.mrf.mxu1 }
 0x187   : > { %v1472_v52 = vmax.f32 %v1446_v28, 0.0  ;;  %v1414_v53 = vmax.f32 %v1147_v5, %v1347_v48  ;;  %v2956_v28 = vmax.f32 %v2736_v51, %v2738_v55 }
 0x188   : > { %v1083_v39 = vpop.f32.mrf.mxu0  ;;  %v1350_v32 = vpop.f32.mrf.mxu1 }
 0x189   : > { %v1862_v33 = vpack.c.bf16 %v1472_v52, %v1471_v20  ;;  %v1148_v0 = vmax.f32 %v2952_v7, %v1083_v39  ;;  %v1447_v17 = vadd.f32 %v2796_v29, %v1414_v53  ;;  %v2957_v53 = vmax.f32 %v2742_v10, %v2744_v11 }
 0x18a   : > { %v2174_v2 = vpop.f32.mrf.mxu0  ;;  %v2242_v24 = vpop.f32.mrf.mxu1 }
 0x18b   : > { %1903 = vst [vmem:[%s2810_s11 + $0x28] sm:$0xff] %v1862_v33   ;;  %v1415_v18 = vmax.f32 %v1148_v0, %v1350_v32  ;;  %v1473_v9 = vmax.f32 %v1447_v17, 0.0  ;;  %v2958_v17 = vmax.f32 %v2748_v36, %v2750_v46 }
 0x18c   : > { %v1088_v57 = vpop.f32.mrf.mxu0  ;;  %v1355_v58 = vpop.f32.mrf.mxu1 }
 0x18d   : > { %v1448_v34 = vadd.f32 %v2796_v29, %v1415_v18  ;;  %v1149_v8 = vmax.f32 %v2953_v50, %v1088_v57 }
 0x18e   : > { %v2177_v37 = vpop.f32.mrf.mxu0  ;;  %v2245_v38 = vpop.f32.mrf.mxu1 }
 0x18f   : > { %v1474_v4 = vmax.f32 %v1448_v34, 0.0  ;;  %v1416_v6 = vmax.f32 %v1149_v8, %v1355_v58  ;;  %v2959_v37 = vmax.f32 %v2754_v63, %v2756_v3 }
 0x190   : > { %v1091_v49 = vpop.f32.mrf.mxu0  ;;  %v1358_v31 = vpop.f32.mrf.mxu1 }
 0x191   : > { %v1867_v22 = vpack.c.bf16 %v1474_v4, %v1473_v9  ;;  %v1150_v54 = vmax.f32 %v2954_v23, %v1091_v49  ;;  %v1449_v19 = vadd.f32 %v2796_v29, %v1416_v6  ;;  %v2960_v23 = vmax.f32 %v2760_v25, %v2762_v35 }
 0x192   : > { %v2178_v42 = vpop.f32.mrf.mxu0  ;;  %v2246_v43 = vpop.f32.mrf.mxu1 }
 0x193   : > { %1904 = vst [vmem:[%s2810_s11 + $0x30] sm:$0xff] %v1867_v22   ;;  %v1417_v44 = vmax.f32 %v1150_v54, %v1358_v31  ;;  %v1475_v12 = vmax.f32 %v1449_v19, 0.0 }
 0x194   : > { %v1096_v15 = vpop.f32.mrf.mxu0  ;;  %v1363_v16 = vpop.f32.mrf.mxu1 }
 0x195   : > { %v1450_v59 = vadd.f32 %v2796_v29, %v1417_v44  ;;  %v1151_v21 = vmax.f32 %v2955_v60, %v1096_v15 }
 0x196   : > { %v2181_v62 = vpop.f32.mrf.mxu0  ;;  %v2249_v61 = vpop.f32.mrf.mxu1 }
 0x197   : > { %v1476_v26 = vmax.f32 %v1450_v59, 0.0  ;;  %v1418_v30 = vmax.f32 %v1151_v21, %v1363_v16  ;;  %v2961_v16 = vmax.f32 %v2766_v45, %v2768_v56 }
 0x198   : > { %v1099_v27 = vpop.f32.mrf.mxu0  ;;  %v1366_v47 = vpop.f32.mrf.mxu1 }
 0x199   : > { %v1872_v48 = vpack.c.bf16 %v1476_v26, %v1475_v12  ;;  %v1152_v13 = vmax.f32 %v2956_v28, %v1099_v27  ;;  %v1451_v14 = vadd.f32 %v2796_v29, %v1418_v30  ;;  %v2962_v30 = vld [vmem:[#allocation2_spill] sm:$0xff]  ;;  %v2963_v27 = vld [vmem:[#allocation3_spill] sm:$0xff] }
 0x19a   : > { %v2182_v5 = vpop.f32.mrf.mxu0  ;;  %v2250_v1 = vpop.f32.mrf.mxu1 }
 0x19b   : > { %1905 = vst [vmem:[%s2810_s11 + $0x38] sm:$0xff] %v1872_v48   ;;  %v1419_v20 = vmax.f32 %v1152_v13, %v1366_v47  ;;  %v1477_v7 = vmax.f32 %v1451_v14, 0.0  ;;  %v2964_v47 = vmax.f32 %v2962_v30, %v2963_v27 }
 0x19c   : > { %v1104_v40 = vpop.f32.mrf.mxu0  ;;  %v1371_v41 = vpop.f32.mrf.mxu1 }
 0x19d   : > { %v1452_v52 = vadd.f32 %v2796_v29, %v1419_v20  ;;  %v1153_v39 = vmax.f32 %v2957_v53, %v1104_v40  ;;  %v2965_v20 = vld [vmem:[#allocation4_spill] sm:$0xff]  ;;  %v2966_v40 = vld [vmem:[#allocation5_spill] sm:$0xff] }
 0x19e   : > { %v2185_v32 = vpop.f32.mrf.mxu0  ;;  %v2253_v33 = vpop.f32.mrf.mxu1 }
 0x19f   : > { %v1478_v51 = vmax.f32 %v1452_v52, 0.0  ;;  %v1420_v55 = vmax.f32 %v1153_v39, %v1371_v41  ;;  %v2967_v41 = vmax.f32 %v2965_v20, %v2966_v40 }
 0x1a0   : > { %v1107_v0 = vpop.f32.mrf.mxu0  ;;  %v1374_v2 = vpop.f32.mrf.mxu1 }
 0x1a1   : > { %v1877_v24 = vpack.c.bf16 %v1478_v51, %v1477_v7  ;;  %v1154_v18 = vmax.f32 %v2958_v17, %v1107_v0  ;;  %v1453_v34 = vadd.f32 %v2796_v29, %v1420_v55 }
 0x1a2   : > { %v2186_v57 = vpop.f32.mrf.mxu0  ;;  %v2254_v58 = vpop.f32.mrf.mxu1 }
 0x1a3   : > { %1906 = vst [vmem:[%s2810_s11 + $0x40] sm:$0xff] %v1877_v24   ;;  %v1421_v50 = vmax.f32 %v1154_v18, %v1374_v2  ;;  %v1479_v6 = vmax.f32 %v1453_v34, 0.0  ;;  %v2968_v2 = vld [vmem:[#allocation6_spill] sm:$0xff]  ;;  %v2969_v24 = vld [vmem:[#allocation7_spill] sm:$0xff] }
 0x1a4   : > { %v1112_v10 = vpop.f32.mrf.mxu0  ;;  %v1379_v11 = vpop.f32.mrf.mxu1  ;;  %v2970_v17 = vmax.f32 %v2968_v2, %v2969_v24 }
 0x1a5   : > { %v1454_v8 = vadd.f32 %v2796_v29, %v1421_v50  ;;  %v1155_v38 = vmax.f32 %v2959_v37, %v1112_v10 }
 0x1a6   : > { %v2189_v9 = vpop.f32.mrf.mxu0  ;;  %v2257_v4 = vpop.f32.mrf.mxu1 }
 0x1a7   : > { %v1480_v36 = vmax.f32 %v1454_v8, 0.0  ;;  %v1422_v46 = vmax.f32 %v1155_v38, %v1379_v11 }
 0x1a8   : > { %v1115_v49 = vpop.f32.mrf.mxu0  ;;  %v1382_v31 = vpop.f32.mrf.mxu1 }
 0x1a9   : > { %v1882_v22 = vpack.c.bf16 %v1480_v36, %v1479_v6  ;;  %v1156_v54 = vmax.f32 %v2960_v23, %v1115_v49  ;;  %v1455_v19 = vadd.f32 %v2796_v29, %v1422_v46 }
 0x1aa   : > { %v2190_v42 = vpop.f32.mrf.mxu0  ;;  %v2258_v43 = vpop.f32.mrf.mxu1 }
 0x1ab   : > { %1907 = vst [vmem:[%s2810_s11 + $0x48] sm:$0xff] %v1882_v22   ;;  %v1423_v44 = vmax.f32 %v1156_v54, %v1382_v31  ;;  %v1481_v62 = vmax.f32 %v1455_v19, 0.0 }
 0x1ac   : > { %v1120_v63 = vpop.f32.mrf.mxu0  ;;  %v1387_v3 = vpop.f32.mrf.mxu1 }
 0x1ad   : > { %v1456_v15 = vadd.f32 %v2796_v29, %v1423_v44  ;;  %v1157_v59 = vmax.f32 %v2961_v16, %v1120_v63 }
 0x1ae   : > { %v2193_v60 = vpop.f32.mrf.mxu0  ;;  %v2261_v21 = vpop.f32.mrf.mxu1 }
 0x1af   : > { %v1482_v25 = vmax.f32 %v1456_v15, 0.0  ;;  %v1424_v35 = vmax.f32 %v1157_v59, %v1387_v3 }
 0x1b0   : > { %v1123_v61 = vpop.f32.mrf.mxu0  ;;  %v1390_v12 = vpop.f32.mrf.mxu1 }
 0x1b1   : > { %v1887_v26 = vpack.c.bf16 %v1482_v25, %v1481_v62  ;;  %v1158_v48 = vmax.f32 %v2964_v47, %v1123_v61  ;;  %v1457_v5 = vadd.f32 %v2796_v29, %v1424_v35 }
 0x1b2   : > { %v2194_v28 = vpop.f32.mrf.mxu0  ;;  %v2262_v13 = vpop.f32.mrf.mxu1 }
 0x1b3   : > { %1908 = vst [vmem:[%s2810_s11 + $0x50] sm:$0xff] %v1887_v26   ;;  %v1425_v1 = vmax.f32 %v1158_v48, %v1390_v12  ;;  %v1483_v32 = vmax.f32 %v1457_v5, 0.0 }
 0x1b4   : > { %v1128_v45 = vpop.f32.mrf.mxu0  ;;  %v1395_v56 = vpop.f32.mrf.mxu1 }
 0x1b5   : > { %v1458_v14 = vadd.f32 %v2796_v29, %v1425_v1  ;;  %v1159_v52 = vmax.f32 %v2967_v41, %v1128_v45 }
 0x1b6   : > { %v2197_v53 = vpop.f32.mrf.mxu0  ;;  %v2265_v39 = vpop.f32.mrf.mxu1 }
 0x1b7   : > { %v1484_v33 = vmax.f32 %v1458_v14, 0.0  ;;  %v1426_v7 = vmax.f32 %v1159_v52, %v1395_v56 }
 0x1b8   : > { %v1131_v51 = vpop.f32.mrf.mxu0  ;;  %v1398_v55 = vpop.f32.mrf.mxu1 }
 0x1b9   : > { %v1892_v0 = vpack.c.bf16 %v1484_v33, %v1483_v32  ;;  %v1160_v18 = vmax.f32 %v2970_v17, %v1131_v51  ;;  %v1459_v34 = vadd.f32 %v2796_v29, %v1426_v7 }
 0x1ba   : > { %v2198_v57 = vpop.f32.mrf.mxu0  ;;  %v2266_v58 = vpop.f32.mrf.mxu1 }
 0x1bb   : > { %1909 = vst [vmem:[%s2810_s11 + $0x58] sm:$0xff] %v1892_v0   ;;  %v1427_v50 = vmax.f32 %v1160_v18, %v1398_v55  ;;  %v1485_v11 = vmax.f32 %v1459_v34, 0.0 }
 0x1bd   : > { %v1460_v10 = vadd.f32 %v2796_v29, %v1427_v50 }
 0x1bf   : > { %v1486_v8 = vmax.f32 %v1460_v10, 0.0 }
 0x1c1   : > { %v1897_v37 = vpack.c.bf16 %v1486_v8, %v1485_v11 }
 0x1c3   : > { %1910 = vst [vmem:[%s2810_s11 + $0x60] sm:$0xff] %v1897_v37  }
 0x1c4 PF: > { %s16_s21 = sadd.s32 1, %s2343_s21  }
 0x1c5   : > { %p13_p4 = scmp.ge.s32.totalorder %s16_s21, 4  }
 0x1c7   :  { %15 = sbr.rel (!%p13_p4) target bundleno = 1 (0x1), region = 83 }

// kernel: lenet_forward.4
= control target key start
LH: loop header
LB: loop body
LE: loop exit
PB: predicated region body
PF: predicated region fallthrough
CT: control target
= control target key end

     0   :  { %s1173_s21 = smov 0   ;;  %s1332_s0 = inlined_call_operand.vmem [shape: bf16[64,256], index: 0, kind: input, shape index: {}]   ;;  %s1333_s1 = inlined_call_operand.vmem [shape: bf16[64,256], index: 1, kind: input, shape index: {}]   ;;  %s1334_s2 = inlined_call_operand.vmem [shape: bf16[64,256], index: 2, kind: input, shape index: {}]   ;;  %s1335_s3 = inlined_call_operand.vmem [shape: bf16[64,256], index: 3, kind: input, shape index: {}]   ;;  %s1336_s4 = inlined_call_operand.vmem [shape: bf16[256,128], index: 4, kind: input, shape index: {}]   ;;  %s1337_s5 = inlined_call_operand.vmem [shape: f32[1,128], index: 5, kind: input, shape index: {}]   ;;  %s1338_s6 = inlined_call_operand.vmem [shape: bf16[64,128], index: 6, kind: output, shape index: {}]  }
   0x1 LB: > { %s893_s22 = sadd.s32 4294967295, %s1136_s21   ;;  %p897_p0 = scmp.ge.s32.totalorder %s1136_s21, 1  ;;  %s1136_s21 = sphi %s1173_s21, %s16_s21  }
   0x2   : > { %p250_p1 = scmp.lt.s32.totalorder %s1136_s21, 3 }
   0x4   : > { %p251_p2 = pnand %p897_p0, %p250_p1 }
   0x5   : > { %s898_s25 = sshll.u32 (!%p251_p2), %s893_s22, 2 }
   0x6   : > { %254 = sbr.rel (%p251_p2) target bundleno = 296 (0x128), region = 44  ;;  %p300_p3 = scmp.lt.s32.totalorder (!%p251_p2), %s898_s25, 7 }
   0xb   : > { %v1090_v0 = vld [vmem:[%s1336_s4 + $0x78] sm:$0xff]   ;;  %v1192_v2 = vld [vmem:[%s1336_s4 + $0x70] sm:$0xff]   ;;  %v1206_v4 = vld [vmem:[%s1336_s4 + $0x68] sm:$0xff]   ;;  %s1340_s25 = smov (!%p300_p3, %s898_s25), 7 }
   0xc   : > { %v1187_v1 = vld [vmem:[%s1336_s4 + $0x38] sm:$0xff]   ;;  %970 = vmatprep.subr.bf16.mxu0 %v1090_v0  ;;  %998 = vmatprep.subr.bf16.mxu1 %v1090_v0  ;;  %v1199_v3 = vld [vmem:[%s1336_s4 + $0x30] sm:$0xff]   ;;  %v1213_v5 = vld [vmem:[%s1336_s4 + $0x28] sm:$0xff]   ;;  %s951_s16 = sshll.u32 %s1340_s25, 3  ;;  %s911_s27 = sshll.u32 %s1340_s25, 2 }
   0xd   : > { %971 = vmatpush3.bf16.msra.mxu0 %v1187_v1  ;;  %999 = vmatpush3.bf16.msra.mxu1 %v1187_v1  ;;  %v1222_v6 = vld [vmem:[%s1336_s4 + $0x60] sm:$0xff]   ;;  %v1237_v8 = vld [vmem:[%s1336_s4 + $0x58] sm:$0xff]   ;;  %s1242_s22 = scalar_lea.vmem %s1332_s0, %s951_s16  ;;  %s1254_s28 = scalar_lea.vmem %s1333_s1, %s951_s16  ;;  %v1100_v10 = vld [vmem:[%s1336_s4 + $0x50] sm:$0xff]  }
   0xe   : > { %972 = vmatprep.subr.bf16.mxu0 %v1192_v2  ;;  %1000 = vmatprep.subr.bf16.mxu1 %v1192_v2  ;;  %v1229_v7 = vld [vmem:[%s1336_s4 + $0x20] sm:$0xff]   ;;  %v1249_v9 = vld [vmem:[%s1336_s4 + $0x18] sm:$0xff]   ;;  %v1101_v13 = vld [vmem:[%s1336_s4 + $0x10] sm:$0xff]   ;;  %s1274_s13 = scalar_lea.vmem %s1334_s2, %s951_s16  ;;  %s1279_s17 = scalar_lea.vmem %s1335_s3, %s951_s16 }
   0xf   : > { %v1108_v11 = vld [vmem:[%s1242_s22 + $0x4] ss:$8 sps:$4 sm:$0xff]   ;;  %v1106_v18 = vld [vmem:[%s1242_s22] ss:$8 sps:$4 sm:$0xff]   ;;  %v1112_v20 = vld [vmem:[%s1242_s22 + $0x14] ss:$8 sps:$4 sm:$0xff]   ;;  %s331_s30 = scalar_lea.vmem %s1338_s6, %s911_s27 }
  0x10   : > { %v1111_v12 = vld [vmem:[%s1254_s28 + $0x4] ss:$8 sps:$4 sm:$0xff]   ;;  %518 = vmatprep.mubr.bf16.mxu0 %v1108_v11  ;;  %v1109_v19 = vld [vmem:[%s1254_s28] ss:$8 sps:$4 sm:$0xff]   ;;  %v1114_v21 = vld [vmem:[%s1254_s28 + $0x14] ss:$8 sps:$4 sm:$0xff]  }
  0x11   : > { %973 = vmatpush3.bf16.msra.mxu0 %v1199_v3  ;;  %1001 = vmatpush3.bf16.msra.mxu1 %v1199_v3  ;;  %v1102_v14 = vld [vmem:[%s1336_s4 + $0x48] sm:$0xff]   ;;  %v1104_v16 = vld [vmem:[%s1336_s4 + $0x40] sm:$0xff]   ;;  %v1116_v22 = vld [vmem:[%s1242_s22 + $0x10] ss:$8 sps:$4 sm:$0xff]  }
  0x12   : > { %974 = vmatprep.subr.bf16.mxu0 %v1206_v4  ;;  %1002 = vmatprep.subr.bf16.mxu1 %v1206_v4  ;;  %v1103_v15 = vld [vmem:[%s1336_s4 + $0x8] sm:$0xff]   ;;  %v1105_v17 = vld [vmem:[%s1336_s4] sm:$0xff]   ;;  %v1117_v23 = vld [vmem:[%s1254_s28 + $0x10] ss:$8 sps:$4 sm:$0xff]  }
  0x13   : > { %591 = vmatprep.mubr.bf16.mxu1 %v1111_v12  ;;  %v1120_v24 = vld [vmem:[%s1274_s13 + $0x4] ss:$8 sps:$4 sm:$0xff]   ;;  %v1118_v26 = vld [vmem:[%s1274_s13] ss:$8 sps:$4 sm:$0xff]   ;;  %v1124_v28 = vld [vmem:[%s1274_s13 + $0x14] ss:$8 sps:$4 sm:$0xff]  }
  0x14   : > { %v1123_v25 = vld [vmem:[%s1279_s17 + $0x4] ss:$8 sps:$4 sm:$0xff]   ;;  %v1121_v27 = vld [vmem:[%s1279_s17] ss:$8 sps:$4 sm:$0xff]   ;;  %v1126_v29 = vld [vmem:[%s1279_s17 + $0x14] ss:$8 sps:$4 sm:$0xff]  }
  0x15   : > { %975 = vmatpush3.bf16.msra.mxu0 %v1213_v5  ;;  %1003 = vmatpush3.bf16.msra.mxu1 %v1213_v5  ;;  %v1128_v30 = vld [vmem:[%s1274_s13 + $0x10] ss:$8 sps:$4 sm:$0xff]  }
  0x16   : > { %976 = vmatprep.subr.bf16.mxu0 %v1222_v6  ;;  %1004 = vmatprep.subr.bf16.mxu1 %v1222_v6  ;;  %v1129_v31 = vld [vmem:[%s1279_s17 + $0x10] ss:$8 sps:$4 sm:$0xff]  }
  0x19   : > { %977 = vmatpush3.bf16.msra.mxu0 %v1229_v7  ;;  %1005 = vmatpush3.bf16.msra.mxu1 %v1229_v7 }
  0x1a   : > { %978 = vmatprep.subr.bf16.mxu0 %v1237_v8  ;;  %1006 = vmatprep.subr.bf16.mxu1 %v1237_v8 }
  0x1d   : > { %979 = vmatpush3.bf16.msra.mxu0 %v1249_v9  ;;  %1007 = vmatpush3.bf16.msra.mxu1 %v1249_v9 }
  0x1e   : > { %980 = vmatprep.subr.bf16.mxu0 %v1100_v10  ;;  %1008 = vmatprep.subr.bf16.mxu1 %v1100_v10 }
  0x21   : > { %981 = vmatpush3.bf16.msra.mxu0 %v1101_v13  ;;  %1009 = vmatpush3.bf16.msra.mxu1 %v1101_v13 }
  0x22   : > { %982 = vmatprep.subr.bf16.mxu0 %v1102_v14  ;;  %1010 = vmatprep.subr.bf16.mxu1 %v1102_v14 }
  0x25   : > { %983 = vmatpush3.bf16.msra.mxu0 %v1103_v15  ;;  %1011 = vmatpush3.bf16.msra.mxu1 %v1103_v15 }
  0x26   : > { %984 = vmatprep.subr.bf16.mxu0 %v1104_v16  ;;  %1012 = vmatprep.subr.bf16.mxu1 %v1104_v16 }
  0x29   : > { %985 = vmatpush3.bf16.msra.mxu0 %v1105_v17  ;;  %1013 = vmatpush3.bf16.msra.mxu1 %v1105_v17 }
  0x2a   : > { %1026 = vmatprep.subr.bf16.mxu0 %v1090_v0  ;;  %1054 = vmatprep.subr.bf16.mxu1 %v1090_v0 }
  0x2c   : > { %519 = vmatmul.mubr.bf16.vlgmr.msra.gmra.mxu0 %v1106_v18  ;;  %592 = vmatmul.mubr.bf16.vlgmr.msra.gmra.mxu1 %v1109_v19 }
  0x2d   : > { %1027 = vmatpush3.bf16.msra.mxu0 %v1187_v1  ;;  %1055 = vmatpush3.bf16.msra.mxu1 %v1187_v1 }
  0x2e   : > { %1028 = vmatprep.subr.bf16.mxu0 %v1192_v2  ;;  %1056 = vmatprep.subr.bf16.mxu1 %v1192_v2 }
  0x2f   : > { %526 = vmatprep.mubr.bf16.mxu0 %v1112_v20  ;;  %599 = vmatprep.mubr.bf16.mxu1 %v1114_v21 }
  0x31   : > { %1029 = vmatpush3.bf16.msra.mxu0 %v1199_v3  ;;  %1057 = vmatpush3.bf16.msra.mxu1 %v1199_v3 }
  0x32   : > { %1030 = vmatprep.subr.bf16.mxu0 %v1206_v4  ;;  %1058 = vmatprep.subr.bf16.mxu1 %v1206_v4 }
  0x34   : > { %527 = vmatmul.mubr.bf16.gmra.mxu0 %v1116_v22  ;;  %600 = vmatmul.mubr.bf16.gmra.mxu1 %v1117_v23 }
  0x35   : > { %1031 = vmatpush3.bf16.msra.mxu0 %v1213_v5  ;;  %1059 = vmatpush3.bf16.msra.mxu1 %v1213_v5  ;;  %v944_v5 = vld [vmem:[%s1337_s5] ss:$0 sm:$0xff] }
  0x36   : > { %1032 = vmatprep.subr.bf16.mxu0 %v1222_v6  ;;  %1060 = vmatprep.subr.bf16.mxu1 %v1222_v6 }
  0x37   : > { %668 = vmatprep.mubr.bf16.mxu0 %v1120_v24  ;;  %745 = vmatprep.mubr.bf16.mxu1 %v1123_v25 }
  0x39   : > { %1033 = vmatpush3.bf16.msra.mxu0 %v1229_v7  ;;  %1061 = vmatpush3.bf16.msra.mxu1 %v1229_v7 }
  0x3a   : > { %1034 = vmatprep.subr.bf16.mxu0 %v1237_v8  ;;  %1062 = vmatprep.subr.bf16.mxu1 %v1237_v8 }
  0x3d   : > { %1035 = vmatpush3.bf16.msra.mxu0 %v1249_v9  ;;  %1063 = vmatpush3.bf16.msra.mxu1 %v1249_v9 }
  0x3e   : > { %1036 = vmatprep.subr.bf16.mxu0 %v1100_v10  ;;  %1064 = vmatprep.subr.bf16.mxu1 %v1100_v10 }
  0x41   : > { %1037 = vmatpush3.bf16.msra.mxu0 %v1101_v13  ;;  %1065 = vmatpush3.bf16.msra.mxu1 %v1101_v13 }
  0x42   : > { %1038 = vmatprep.subr.bf16.mxu0 %v1102_v14  ;;  %1066 = vmatprep.subr.bf16.mxu1 %v1102_v14 }
  0x45   : > { %1039 = vmatpush3.bf16.msra.mxu0 %v1103_v15  ;;  %1067 = vmatpush3.bf16.msra.mxu1 %v1103_v15 }
  0x46   : > { %1040 = vmatprep.subr.bf16.mxu0 %v1104_v16  ;;  %1068 = vmatprep.subr.bf16.mxu1 %v1104_v16 }
  0x49   : > { %1041 = vmatpush3.bf16.msra.mxu0 %v1105_v17  ;;  %1069 = vmatpush3.bf16.msra.mxu1 %v1105_v17 }
  0x4c   : > { %669 = vmatmul.mubr.bf16.vlgmr.msra.gmra.mxu0 %v1118_v26  ;;  %746 = vmatmul.mubr.bf16.vlgmr.msra.gmra.mxu1 %v1121_v27 }
  0x4d   : > { %676 = vmatprep.mubr.bf16.mxu0 %v1124_v28  ;;  %753 = vmatprep.mubr.bf16.mxu1 %v1126_v29 }
  0x54   : > { %677 = vmatmul.mubr.bf16.gmra.mxu0 %v1128_v30  ;;  %754 = vmatmul.mubr.bf16.gmra.mxu1 %v1129_v31 }
  0xec   : > { %v986_v32 = vpop.f32.mrf.mxu0  ;;  %v1014_v33 = vpop.f32.mrf.mxu1 }
  0xee   : > { %v987_v34 = vpop.f32.mrf.mxu0  ;;  %v1015_v35 = vpop.f32.mrf.mxu1 }
  0xef   : > { %v988_v48 = vadd.f32 %v987_v34, %v986_v32  ;;  %v1016_v49 = vadd.f32 %v1015_v35, %v1014_v33 }
  0xf0   : > { %v989_v36 = vpop.f32.mrf.mxu0  ;;  %v1017_v37 = vpop.f32.mrf.mxu1 }
  0xf1   : > { %v608_v56 = vmax.f32 %v988_v48, %v1016_v49 }
  0xf2   : > { %v990_v38 = vpop.f32.mrf.mxu0  ;;  %v1018_v39 = vpop.f32.mrf.mxu1 }
  0xf3   : > { %v991_v52 = vadd.f32 %v990_v38, %v989_v36  ;;  %v1019_v53 = vadd.f32 %v1018_v39, %v1017_v37 }
  0xf4   : > { %v992_v40 = vpop.f32.mrf.mxu0  ;;  %v1020_v41 = vpop.f32.mrf.mxu1 }
  0xf5   : > { %v609_v62 = vmax.f32 %v991_v52, %v1019_v53 }
  0xf6   : > { %v993_v42 = vpop.f32.mrf.mxu0  ;;  %v1021_v43 = vpop.f32.mrf.mxu1 }
  0xf7   : > { %v994_v1 = vadd.f32 %v993_v42, %v992_v40  ;;  %v1022_v2 = vadd.f32 %v1021_v43, %v1020_v41 }
  0xf8   : > { %v995_v44 = vpop.f32.mrf.mxu0  ;;  %v1023_v45 = vpop.f32.mrf.mxu1 }
  0xf9   : > { %v610_v14 = vmax.f32 %v994_v1, %v1022_v2 }
  0xfa   : > { %v996_v46 = vpop.f32.mrf.mxu0  ;;  %v1024_v47 = vpop.f32.mrf.mxu1 }
  0xfb   : > { %v997_v10 = vadd.f32 %v996_v46, %v995_v44  ;;  %v1025_v11 = vadd.f32 %v1024_v47, %v1023_v45 }
  0xfd   : > { %v611_v23 = vmax.f32 %v997_v10, %v1025_v11 }
 0x10c   : > { %v1042_v50 = vpop.f32.mrf.mxu0  ;;  %v1070_v51 = vpop.f32.mrf.mxu1 }
 0x10e   : > { %v1043_v54 = vpop.f32.mrf.mxu0  ;;  %v1071_v55 = vpop.f32.mrf.mxu1 }
 0x10f   : > { %v1044_v57 = vadd.f32 %v1043_v54, %v1042_v50  ;;  %v1072_v61 = vadd.f32 %v1071_v55, %v1070_v51 }
 0x110   : > { %v1045_v58 = vpop.f32.mrf.mxu0  ;;  %v1073_v59 = vpop.f32.mrf.mxu1 }
 0x111   : > { %v685_v60 = vmax.f32 %v608_v56, %v1044_v57 }
 0x112   : > { %v1046_v63 = vpop.f32.mrf.mxu0  ;;  %v1074_v0 = vpop.f32.mrf.mxu1 }
 0x113   : > { %v762_v3 = vmax.f32 %v685_v60, %v1072_v61  ;;  %v1047_v4 = vadd.f32 %v1046_v63, %v1045_v58  ;;  %v1075_v9 = vadd.f32 %v1074_v0, %v1073_v59 }
 0x114   : > { %v1048_v6 = vpop.f32.mrf.mxu0  ;;  %v1076_v7 = vpop.f32.mrf.mxu1 }
 0x115   : > { %v686_v8 = vmax.f32 %v609_v62, %v1047_v4  ;;  %v773_v15 = vadd.f32 %v944_v5, %v762_v3 }
 0x116   : > { %v1049_v12 = vpop.f32.mrf.mxu0  ;;  %v1077_v13 = vpop.f32.mrf.mxu1 }
 0x117   : > { %v763_v16 = vmax.f32 %v686_v8, %v1075_v9  ;;  %v1050_v17 = vadd.f32 %v1049_v12, %v1048_v6  ;;  %v1078_v22 = vadd.f32 %v1077_v13, %v1076_v7  ;;  %v777_v26 = vmax.f32 %v773_v15, 0.0 }
 0x118   : > { %v1051_v18 = vpop.f32.mrf.mxu0  ;;  %v1079_v19 = vpop.f32.mrf.mxu1 }
 0x119   : > { %v774_v20 = vadd.f32 %v944_v5, %v763_v16  ;;  %v687_v21 = vmax.f32 %v610_v14, %v1050_v17 }
 0x11a   : > { %v1052_v24 = vpop.f32.mrf.mxu0  ;;  %v1080_v25 = vpop.f32.mrf.mxu1 }
 0x11b   : > { %v778_v27 = vmax.f32 %v774_v20, 0.0  ;;  %v764_v28 = vmax.f32 %v687_v21, %v1078_v22  ;;  %v1053_v29 = vadd.f32 %v1052_v24, %v1051_v18  ;;  %v1081_v32 = vadd.f32 %v1080_v25, %v1079_v19 }
 0x11d   : > { %v962_v30 = vpack.c.bf16 %v778_v27, %v777_v26  ;;  %v688_v31 = vmax.f32 %v611_v23, %v1053_v29  ;;  %v775_v33 = vadd.f32 %v944_v5, %v764_v28 }
 0x11f   : > { %963 = vst [vmem:[%s331_s30] sm:$0xff] %v962_v30   ;;  %v765_v34 = vmax.f32 %v688_v31, %v1081_v32  ;;  %v779_v36 = vmax.f32 %v775_v33, 0.0 }
 0x121   : > { %v776_v35 = vadd.f32 %v944_v5, %v765_v34 }
 0x123   : > { %v780_v37 = vmax.f32 %v776_v35, 0.0 }
 0x125   : > { %v967_v38 = vpack.c.bf16 %v780_v37, %v779_v36 }
 0x127   : > { %969 = vst [vmem:[%s331_s30 + $0x8] sm:$0xff] %v967_v38  }
 0x128 PF: > { %s16_s21 = sadd.s32 1, %s1136_s21  }
 0x129   : > { %p13_p4 = scmp.ge.s32.totalorder %s16_s21, 4  }
 0x12b   :  { %15 = sbr.rel (!%p13_p4) target bundleno = 1 (0x1), region = 83 }

// kernel: lenet_forward.5
= control target key start
LH: loop header
LB: loop body
LE: loop exit
PB: predicated region body
PF: predicated region fallthrough
CT: control target
= control target key end

     0   :  { %s3786_s24 = smov 0   ;;  %s4523_s0 = inlined_call_operand.vmem [shape: bf16[32,3200], index: 0, kind: input, shape index: {}]   ;;  %s4524_s1 = inlined_call_operand.vmem [shape: bf16[3200,128], index: 1, kind: input, shape index: {}]   ;;  %s4525_s2 = inlined_call_operand.vmem [shape: f32[1,128], index: 2, kind: input, shape index: {}]   ;;  %s4526_s3 = inlined_call_operand.vmem [shape: bf16[128,128], index: 3, kind: input, shape index: {}]   ;;  %s4527_s4 = inlined_call_operand.vmem [shape: f32[1,128], index: 4, kind: input, shape index: {}]   ;;  %s4528_s5 = inlined_call_operand.vmem [shape: bf16[128,128], index: 5, kind: input, shape index: {}]   ;;  %s4529_s6 = inlined_call_operand.vmem [shape: f32[1,128], index: 6, kind: input, shape index: {}]   ;;  %s4530_s7 = inlined_call_operand.vmem [shape: f32[32,128], index: 7, kind: output, shape index: {}]  }
   0x1 LB: > { %s2866_s25 = sadd.s32 4294967295, %s3742_s24   ;;  %p2870_p0 = scmp.ge.s32.totalorder %s3742_s24, 1  ;;  %s3742_s24 = sphi %s3786_s24, %s17_s24  }
   0x2   : > { %p239_p1 = scmp.lt.s32.totalorder %s3742_s24, 3 }
   0x4   : > { %p240_p2 = pnand %p2870_p0, %p239_p1 }
   0x5   : > { %s2871_s10 = sshll.u32 (!%p240_p2), %s2866_s25, 1 }
   0x6   : > { %243 = sbr.rel (%p240_p2) target bundleno = 842 (0x34a), region = 48  ;;  %p273_p3 = scmp.lt.s32.totalorder (!%p240_p2), %s2871_s10, 3 }
   0xb   : > { %v3483_v0 = vld [vmem:[%s4524_s1 + $0x78] sm:$0xff]   ;;  %v3487_v4 = vld [vmem:[%s4524_s1 + $0x70] sm:$0xff]   ;;  %v3491_v8 = vld [vmem:[%s4524_s1 + $0x68] sm:$0xff]   ;;  %s4532_s10 = smov (!%p273_p3, %s2871_s10), 3  ;;  %vm3745_vm0 = vmmov 0  }
   0xc   : > { %v3484_v1 = vld [vmem:[%s4524_s1 + $0x38] sm:$0xff]   ;;  %3121 = vmatprep.subr.bf16.mxu0 %v3483_v0  ;;  %v3488_v5 = vld [vmem:[%s4524_s1 + $0x30] sm:$0xff]   ;;  %v3492_v9 = vld [vmem:[%s4524_s1 + $0x28] sm:$0xff]   ;;  %s3472_s12 = smul.u32 100, %s4532_s10  ;;  %s2874_s25 = sshll.u32 %s4532_s10, 3 }
   0xd   : > { %v3485_v2 = vld [vmem:[%s4524_s1 + $0xf8] sm:$0xff]   ;;  %3122 = vmatpush3.bf16.msra.mxu0 %v3484_v1  ;;  %v3489_v6 = vld [vmem:[%s4524_s1 + $0xf0] sm:$0xff]   ;;  %v3493_v10 = vld [vmem:[%s4524_s1 + $0xe8] sm:$0xff]   ;;  %s283_s26 = scalar_lea.vmem %s4530_s7, %s2874_s25 }
   0xe   : > { %v3486_v3 = vld [vmem:[%s4524_s1 + $0xb8] sm:$0xff]   ;;  %3143 = vmatprep.subr.bf16.mxu1 %v3485_v2  ;;  %3123 = vmatprep.subr.bf16.mxu0 %v3487_v4  ;;  %v3490_v7 = vld [vmem:[%s4524_s1 + $0xb0] sm:$0xff]   ;;  %v3494_v11 = vld [vmem:[%s4524_s1 + $0xa8] sm:$0xff]   ;;  %s3889_s22 = scalar_lea.vmem %s4523_s0, %s3472_s12 }
   0xf   : > { %3144 = vmatpush3.bf16.msra.mxu1 %v3486_v3  ;;  %v3495_v12 = vld [vmem:[%s4524_s1 + $0x60] sm:$0xff]   ;;  %v3499_v16 = vld [vmem:[%s4524_s1 + $0x58] sm:$0xff]   ;;  %v3503_v20 = vld [vmem:[%s4524_s1 + $0x50] sm:$0xff]  }
  0x10   : > { %3145 = vmatprep.subr.bf16.mxu1 %v3489_v6  ;;  %v3496_v13 = vld [vmem:[%s4524_s1 + $0x20] sm:$0xff]   ;;  %v3500_v17 = vld [vmem:[%s4524_s1 + $0x18] sm:$0xff]   ;;  %v3504_v21 = vld [vmem:[%s4524_s1 + $0x10] sm:$0xff]  }
  0x11   : > { %3124 = vmatpush3.bf16.msra.mxu0 %v3488_v5  ;;  %v3497_v14 = vld [vmem:[%s4524_s1 + $0xe0] sm:$0xff]   ;;  %v3501_v18 = vld [vmem:[%s4524_s1 + $0xd8] sm:$0xff]   ;;  %v3505_v22 = vld [vmem:[%s4524_s1 + $0xd0] sm:$0xff]  }
  0x12   : > { %3125 = vmatprep.subr.bf16.mxu0 %v3491_v8  ;;  %v3498_v15 = vld [vmem:[%s4524_s1 + $0xa0] sm:$0xff]   ;;  %v3502_v19 = vld [vmem:[%s4524_s1 + $0x98] sm:$0xff]   ;;  %v3506_v23 = vld [vmem:[%s4524_s1 + $0x90] sm:$0xff]  }
  0x13   : > { %3146 = vmatpush3.bf16.msra.mxu1 %v3490_v7  ;;  %v3507_v24 = vld [vmem:[%s4524_s1 + $0x48] sm:$0xff]   ;;  %v3511_v28 = vld [vmem:[%s4524_s1 + $0x40] sm:$0xff]   ;;  %v3518_v34 = vld [vmem:[%s4524_s1 + $0x178] sm:$0xff]  }
  0x14   : > { %3147 = vmatprep.subr.bf16.mxu1 %v3493_v10  ;;  %v3508_v25 = vld [vmem:[%s4524_s1 + $0x8] sm:$0xff]   ;;  %v3512_v29 = vld [vmem:[%s4524_s1] sm:$0xff]   ;;  %v3522_v37 = vld [vmem:[%s4524_s1 + $0x138] sm:$0xff]  }
  0x15   : > { %3126 = vmatpush3.bf16.msra.mxu0 %v3492_v9  ;;  %v3509_v26 = vld [vmem:[%s4524_s1 + $0xc8] sm:$0xff]   ;;  %v3513_v30 = vld [vmem:[%s4524_s1 + $0xc0] sm:$0xff]   ;;  %v3523_v38 = vld [vmem:[%s4524_s1 + $0x1f8] sm:$0xff]  }
  0x16   : > { %3127 = vmatprep.subr.bf16.mxu0 %v3495_v12  ;;  %v3510_v27 = vld [vmem:[%s4524_s1 + $0x88] sm:$0xff]   ;;  %v3514_v31 = vld [vmem:[%s3889_s22] ss:$100 sps:$4 sm:$0xff]   ;;  %v3524_v39 = vld [vmem:[%s4524_s1 + $0x1b8] sm:$0xff]  }
  0x17   : > { %3148 = vmatpush3.bf16.msra.mxu1 %v3494_v11  ;;  %v3516_v32 = vld [vmem:[%s3889_s22 + $0x4] ss:$100 sps:$4 sm:$0xff]   ;;  %v3521_v36 = vld [vmem:[%s3889_s22 + $0xc] ss:$100 sps:$4 sm:$0xff]   ;;  %v3537_v52 = vld [vmem:[%s4524_s1 + $0x158] sm:$0xff]  }
  0x18   : > { %3149 = vmatprep.subr.bf16.mxu1 %v3497_v14  ;;  %v3517_v33 = vld [vmem:[%s4524_s1 + $0x80] sm:$0xff]   ;;  %2077 = vmatprep.mubr.bf16.mxu0 %v3516_v32  ;;  %v3519_v35 = vld [vmem:[%s3889_s22 + $0x8] ss:$100 sps:$4 sm:$0xff]   ;;  %v3525_v40 = vld [vmem:[%s4524_s1 + $0x170] sm:$0xff]  }
  0x19   : > { %3128 = vmatpush3.bf16.msra.mxu0 %v3496_v13  ;;  %2118 = vmatprep.mubr.bf16.mxu1 %v3521_v36  ;;  %v3526_v41 = vld [vmem:[%s4524_s1 + $0x130] sm:$0xff]   ;;  %v3529_v44 = vld [vmem:[%s4524_s1 + $0x168] sm:$0xff]   ;;  %v3533_v48 = vld [vmem:[%s4524_s1 + $0x160] sm:$0xff]  }
  0x1a   : > { %3129 = vmatprep.subr.bf16.mxu0 %v3499_v16  ;;  %v3527_v42 = vld [vmem:[%s4524_s1 + $0x1f0] sm:$0xff]   ;;  %v3530_v45 = vld [vmem:[%s4524_s1 + $0x128] sm:$0xff]   ;;  %v3534_v49 = vld [vmem:[%s4524_s1 + $0x120] sm:$0xff]  }
  0x1b   : > { %3150 = vmatpush3.bf16.msra.mxu1 %v3498_v15  ;;  %v3528_v43 = vld [vmem:[%s4524_s1 + $0x1b0] sm:$0xff]   ;;  %v3531_v46 = vld [vmem:[%s4524_s1 + $0x1e8] sm:$0xff]   ;;  %v3535_v50 = vld [vmem:[%s4524_s1 + $0x1e0] sm:$0xff]  }
  0x1c   : > { %3151 = vmatprep.subr.bf16.mxu1 %v3501_v18  ;;  %v3532_v47 = vld [vmem:[%s4524_s1 + $0x1a8] sm:$0xff]   ;;  %v3536_v51 = vld [vmem:[%s4524_s1 + $0x1a0] sm:$0xff]   ;;  %v3538_v53 = vld [vmem:[%s4524_s1 + $0x118] sm:$0xff]  }
  0x1d   : > { %3130 = vmatpush3.bf16.msra.mxu0 %v3500_v17  ;;  %v3539_v54 = vld [vmem:[%s4524_s1 + $0x1d8] sm:$0xff]   ;;  %v3541_v56 = vld [vmem:[%s4524_s1 + $0x150] sm:$0xff]   ;;  %v3545_v60 = vld [vmem:[%s4524_s1 + $0x148] sm:$0xff]  }
  0x1e   : > { %3131 = vmatprep.subr.bf16.mxu0 %v3503_v20  ;;  %v3540_v55 = vld [vmem:[%s4524_s1 + $0x198] sm:$0xff]   ;;  %v3542_v57 = vld [vmem:[%s4524_s1 + $0x110] sm:$0xff]   ;;  %v3546_v61 = vld [vmem:[%s4524_s1 + $0x108] sm:$0xff]  }
  0x1f   : > { %3152 = vmatpush3.bf16.msra.mxu1 %v3502_v19  ;;  %v3543_v58 = vld [vmem:[%s4524_s1 + $0x1d0] sm:$0xff]   ;;  %v3547_v62 = vld [vmem:[%s4524_s1 + $0x1c8] sm:$0xff]   ;;  %v3549_v0 = vld [vmem:[%s4524_s1 + $0x140] sm:$0xff]  }
  0x20   : > { %3153 = vmatprep.subr.bf16.mxu1 %v3505_v22  ;;  %v3544_v59 = vld [vmem:[%s4524_s1 + $0x190] sm:$0xff]   ;;  %v3548_v63 = vld [vmem:[%s4524_s1 + $0x188] sm:$0xff]   ;;  %v3550_v1 = vld [vmem:[%s4524_s1 + $0x100] sm:$0xff]  }
  0x21   : > { %3132 = vmatpush3.bf16.msra.mxu0 %v3504_v21  ;;  %v3551_v2 = vld [vmem:[%s4524_s1 + $0x1c0] sm:$0xff]   ;;  %v3552_v3 = vld [vmem:[%s3889_s22 + $0x10] ss:$100 sps:$4 sm:$0xff]   ;;  %v3556_v6 = vld [vmem:[%s4524_s1 + $0x278] sm:$0xff]  }
  0x22   : > { %3133 = vmatprep.subr.bf16.mxu0 %v3507_v24  ;;  %v3554_v4 = vld [vmem:[%s3889_s22 + $0x14] ss:$100 sps:$4 sm:$0xff]   ;;  %v3555_v5 = vld [vmem:[%s4524_s1 + $0x180] sm:$0xff]   ;;  %v3567_v16 = vld [vmem:[%s4524_s1 + $0x268] sm:$0xff]  }
  0x23   : > { %3154 = vmatpush3.bf16.msra.mxu1 %v3506_v23  ;;  %v3557_v7 = vld [vmem:[%s3889_s22 + $0x18] ss:$100 sps:$4 sm:$0xff]   ;;  %v3563_v12 = vld [vmem:[%s4524_s1 + $0x270] sm:$0xff]   ;;  %v3568_v17 = vld [vmem:[%s4524_s1 + $0x228] sm:$0xff]  }
  0x24   : > { %3155 = vmatprep.subr.bf16.mxu1 %v3509_v26  ;;  %v3559_v8 = vld [vmem:[%s3889_s22 + $0x1c] ss:$100 sps:$4 sm:$0xff]   ;;  %v3564_v13 = vld [vmem:[%s4524_s1 + $0x230] sm:$0xff]   ;;  %v3569_v18 = vld [vmem:[%s4524_s1 + $0x2e8] sm:$0xff]  }
  0x25   : > { %3134 = vmatpush3.bf16.msra.mxu0 %v3508_v25  ;;  %v3560_v9 = vld [vmem:[%s4524_s1 + $0x238] sm:$0xff]   ;;  %v3565_v14 = vld [vmem:[%s4524_s1 + $0x2f0] sm:$0xff]   ;;  %v3570_v19 = vld [vmem:[%s4524_s1 + $0x2a8] sm:$0xff]  }
  0x26   : > { %3135 = vmatprep.subr.bf16.mxu0 %v3511_v28  ;;  %v3561_v10 = vld [vmem:[%s4524_s1 + $0x2f8] sm:$0xff]   ;;  %v3566_v15 = vld [vmem:[%s4524_s1 + $0x2b0] sm:$0xff]   ;;  %v3571_v20 = vld [vmem:[%s4524_s1 + $0x260] sm:$0xff]  }
  0x27   : > { %3156 = vmatpush3.bf16.msra.mxu1 %v3510_v27  ;;  %v3562_v11 = vld [vmem:[%s4524_s1 + $0x2b8] sm:$0xff]   ;;  %v3572_v21 = vld [vmem:[%s4524_s1 + $0x220] sm:$0xff]   ;;  %v3579_v28 = vld [vmem:[%s4524_s1 + $0x250] sm:$0xff]  }
  0x28   : > { %3157 = vmatprep.subr.bf16.mxu1 %v3513_v30  ;;  %v3573_v22 = vld [vmem:[%s4524_s1 + $0x2e0] sm:$0xff]   ;;  %v3575_v24 = vld [vmem:[%s4524_s1 + $0x258] sm:$0xff]   ;;  %v3581_v30 = vld [vmem:[%s4524_s1 + $0x2d0] sm:$0xff]  }
  0x29   : > { %3136 = vmatpush3.bf16.msra.mxu0 %v3512_v29  ;;  %v3574_v23 = vld [vmem:[%s4524_s1 + $0x2a0] sm:$0xff]   ;;  %v3576_v25 = vld [vmem:[%s4524_s1 + $0x218] sm:$0xff]   ;;  %v3580_v29 = vld [vmem:[%s4524_s1 + $0x210] sm:$0xff]  }
  0x2a   : > { %3165 = vmatprep.subr.bf16.mxu0 %v3518_v34  ;;  %v3577_v26 = vld [vmem:[%s4524_s1 + $0x2d8] sm:$0xff]   ;;  %v3583_v32 = vld [vmem:[%s4524_s1 + $0x248] sm:$0xff]   ;;  %v3587_v36 = vld [vmem:[%s4524_s1 + $0x240] sm:$0xff]  }
  0x2b   : > { %3158 = vmatpush3.bf16.msra.mxu1 %v3517_v33  ;;  %v3578_v27 = vld [vmem:[%s4524_s1 + $0x298] sm:$0xff]   ;;  %v3584_v33 = vld [vmem:[%s4524_s1 + $0x208] sm:$0xff]  }
  0x2c   : > { %2078 = vmatmul.mubr.bf16.vlgmr.msra.gmra.mxu0 %v3514_v31  ;;  %3187 = vmatprep.subr.bf16.mxu1 %v3523_v38  ;;  %v3582_v31 = vld [vmem:[%s4524_s1 + $0x290] sm:$0xff]   ;;  %v3585_v34 = vld [vmem:[%s4524_s1 + $0x2c8] sm:$0xff]   ;;  %v3589_v38 = vld [vmem:[%s4524_s1 + $0x2c0] sm:$0xff]  }
  0x2d   : > { %3166 = vmatpush3.bf16.msra.mxu0 %v3522_v37  ;;  %2159 = vmatprep.mubr.bf16.mxu0 %v3554_v4  ;;  %v3588_v37 = vld [vmem:[%s4524_s1 + $0x200] sm:$0xff]   ;;  %v3621_v4 = vld [vmem:[%s4524_s1 + $0x348] sm:$0xff]  }
  0x2e   : > { %2119 = vmatmul.mubr.bf16.vlgmr.msra.gmra.mxu1 %v3519_v35  ;;  %3167 = vmatprep.subr.bf16.mxu0 %v3525_v40  ;;  %v3586_v35 = vld [vmem:[%s4524_s1 + $0x288] sm:$0xff]  }
  0x2f   : > { %3188 = vmatpush3.bf16.msra.mxu1 %v3524_v39  ;;  %2200 = vmatprep.mubr.bf16.mxu1 %v3559_v8  ;;  %v3590_v39 = vld [vmem:[%s3889_s22 + $0x20] ss:$100 sps:$4 sm:$0xff]  }
  0x30   : > { %3189 = vmatprep.subr.bf16.mxu1 %v3527_v42  ;;  %v3592_v40 = vld [vmem:[%s3889_s22 + $0x24] ss:$100 sps:$4 sm:$0xff]   ;;  %v3594_v42 = vld [vmem:[%s4524_s1 + $0x378] sm:$0xff]  }
  0x31   : > { %3168 = vmatpush3.bf16.msra.mxu0 %v3526_v41  ;;  %v3593_v41 = vld [vmem:[%s4524_s1 + $0x280] sm:$0xff]  }
  0x32   : > { %3169 = vmatprep.subr.bf16.mxu0 %v3529_v44  ;;  %v3597_v44 = vld [vmem:[%s3889_s22 + $0x2c] ss:$100 sps:$4 sm:$0xff]   ;;  %v3625_v8 = vld [vmem:[%s4524_s1 + $0x340] sm:$0xff]  }
  0x33   : > { %3190 = vmatpush3.bf16.msra.mxu1 %v3528_v43  ;;  %v3595_v43 = vld [vmem:[%s3889_s22 + $0x28] ss:$100 sps:$4 sm:$0xff]  }
  0x34   : > { %3191 = vmatprep.subr.bf16.mxu1 %v3531_v46  ;;  %v3599_v46 = vld [vmem:[%s4524_s1 + $0x3f8] sm:$0xff]  }
  0x35   : > { %3170 = vmatpush3.bf16.msra.mxu0 %v3530_v45  ;;  %v3598_v45 = vld [vmem:[%s4524_s1 + $0x338] sm:$0xff]  }
  0x36   : > { %3171 = vmatprep.subr.bf16.mxu0 %v3533_v48  ;;  %v3601_v48 = vld [vmem:[%s4524_s1 + $0x370] sm:$0xff]  }
  0x37   : > { %3192 = vmatpush3.bf16.msra.mxu1 %v3532_v47  ;;  %v3600_v47 = vld [vmem:[%s4524_s1 + $0x3b8] sm:$0xff]  }
  0x38   : > { %3193 = vmatprep.subr.bf16.mxu1 %v3535_v50  ;;  %v3603_v50 = vld [vmem:[%s4524_s1 + $0x3f0] sm:$0xff]  }
  0x39   : > { %3172 = vmatpush3.bf16.msra.mxu0 %v3534_v49  ;;  %v3602_v49 = vld [vmem:[%s4524_s1 + $0x330] sm:$0xff]  }
  0x3a   : > { %3173 = vmatprep.subr.bf16.mxu0 %v3537_v52  ;;  %v3605_v52 = vld [vmem:[%s4524_s1 + $0x368] sm:$0xff]  }
  0x3b   : > { %3194 = vmatpush3.bf16.msra.mxu1 %v3536_v51  ;;  %v3604_v51 = vld [vmem:[%s4524_s1 + $0x3b0] sm:$0xff]  }
  0x3c   : > { %3195 = vmatprep.subr.bf16.mxu1 %v3539_v54  ;;  %v3607_v54 = vld [vmem:[%s4524_s1 + $0x3e8] sm:$0xff]  }
  0x3d   : > { %3174 = vmatpush3.bf16.msra.mxu0 %v3538_v53  ;;  %v3606_v53 = vld [vmem:[%s4524_s1 + $0x328] sm:$0xff]  }
  0x3e   : > { %3175 = vmatprep.subr.bf16.mxu0 %v3541_v56  ;;  %v3609_v56 = vld [vmem:[%s4524_s1 + $0x360] sm:$0xff]  }
  0x3f   : > { %3196 = vmatpush3.bf16.msra.mxu1 %v3540_v55  ;;  %v3608_v55 = vld [vmem:[%s4524_s1 + $0x3a8] sm:$0xff]  }
  0x40   : > { %3197 = vmatprep.subr.bf16.mxu1 %v3543_v58  ;;  %v3611_v58 = vld [vmem:[%s4524_s1 + $0x3e0] sm:$0xff]  }
  0x41   : > { %3176 = vmatpush3.bf16.msra.mxu0 %v3542_v57  ;;  %v3610_v57 = vld [vmem:[%s4524_s1 + $0x320] sm:$0xff]  }
  0x42   : > { %3177 = vmatprep.subr.bf16.mxu0 %v3545_v60  ;;  %v3613_v60 = vld [vmem:[%s4524_s1 + $0x358] sm:$0xff]  }
  0x43   : > { %3198 = vmatpush3.bf16.msra.mxu1 %v3544_v59  ;;  %v3612_v59 = vld [vmem:[%s4524_s1 + $0x3a0] sm:$0xff]  }
  0x44   : > { %3199 = vmatprep.subr.bf16.mxu1 %v3547_v62  ;;  %v3615_v62 = vld [vmem:[%s4524_s1 + $0x3d8] sm:$0xff]  }
  0x45   : > { %3178 = vmatpush3.bf16.msra.mxu0 %v3546_v61  ;;  %v3614_v61 = vld [vmem:[%s4524_s1 + $0x318] sm:$0xff]  }
  0x46   : > { %3179 = vmatprep.subr.bf16.mxu0 %v3549_v0  ;;  %v3617_v0 = vld [vmem:[%s4524_s1 + $0x350] sm:$0xff]  }
  0x47   : > { %3200 = vmatpush3.bf16.msra.mxu1 %v3548_v63  ;;  %v3616_v63 = vld [vmem:[%s4524_s1 + $0x398] sm:$0xff]  }
  0x48   : > { %3201 = vmatprep.subr.bf16.mxu1 %v3551_v2  ;;  %v3619_v2 = vld [vmem:[%s4524_s1 + $0x3d0] sm:$0xff]  }
  0x49   : > { %3180 = vmatpush3.bf16.msra.mxu0 %v3550_v1  ;;  %v3618_v1 = vld [vmem:[%s4524_s1 + $0x310] sm:$0xff]  }
  0x4a   : > { %3209 = vmatprep.subr.bf16.mxu0 %v3556_v6  ;;  %v3623_v6 = vld [vmem:[%s4524_s1 + $0x3c8] sm:$0xff]  }
  0x4b   : > { %3202 = vmatpush3.bf16.msra.mxu1 %v3555_v5  ;;  %v3622_v5 = vld [vmem:[%s4524_s1 + $0x308] sm:$0xff]  }
  0x4c   : > { %2160 = vmatmul.mubr.bf16.vlgmr.msra.gmra.mxu0 %v3552_v3  ;;  %3231 = vmatprep.subr.bf16.mxu1 %v3561_v10  ;;  %v3620_v3 = vld [vmem:[%s4524_s1 + $0x390] sm:$0xff]   ;;  %v3627_v10 = vld [vmem:[%s4524_s1 + $0x3c0] sm:$0xff]  }
  0x4d   : > { %3210 = vmatpush3.bf16.msra.mxu0 %v3560_v9  ;;  %2241 = vmatprep.mubr.bf16.mxu0 %v3592_v40  ;;  %v3626_v9 = vld [vmem:[%s4524_s1 + $0x300] sm:$0xff]   ;;  %v3659_v40 = vld [vmem:[%s4524_s1 + $0x448] sm:$0xff]  }
  0x4e   : > { %2201 = vmatmul.mubr.bf16.vlgmr.msra.gmra.mxu1 %v3557_v7  ;;  %3211 = vmatprep.subr.bf16.mxu0 %v3563_v12  ;;  %v3624_v7 = vld [vmem:[%s4524_s1 + $0x388] sm:$0xff]   ;;  %v3630_v12 = vld [vmem:[%s3889_s22 + $0x34] ss:$100 sps:$4 sm:$0xff]  }
  0x4f   : > { %3232 = vmatpush3.bf16.msra.mxu1 %v3562_v11  ;;  %2282 = vmatprep.mubr.bf16.mxu1 %v3597_v44  ;;  %v3628_v11 = vld [vmem:[%s3889_s22 + $0x30] ss:$100 sps:$4 sm:$0xff]   ;;  %v3663_v44 = vld [vmem:[%s4524_s1 + $0x440] sm:$0xff]  }
  0x50   : > { %3233 = vmatprep.subr.bf16.mxu1 %v3565_v14  ;;  %v3632_v14 = vld [vmem:[%s4524_s1 + $0x478] sm:$0xff]  }
  0x51   : > { %3212 = vmatpush3.bf16.msra.mxu0 %v3564_v13  ;;  %v3631_v13 = vld [vmem:[%s4524_s1 + $0x380] sm:$0xff]  }
  0x52   : > { %3213 = vmatprep.subr.bf16.mxu0 %v3567_v16  ;;  %v3635_v16 = vld [vmem:[%s3889_s22 + $0x3c] ss:$100 sps:$4 sm:$0xff]  }
  0x53   : > { %3234 = vmatpush3.bf16.msra.mxu1 %v3566_v15  ;;  %v3633_v15 = vld [vmem:[%s3889_s22 + $0x38] ss:$100 sps:$4 sm:$0xff]  }
  0x54   : > { %3235 = vmatprep.subr.bf16.mxu1 %v3569_v18  ;;  %v3637_v18 = vld [vmem:[%s4524_s1 + $0x4f8] sm:$0xff]  }
  0x55   : > { %3214 = vmatpush3.bf16.msra.mxu0 %v3568_v17  ;;  %v3636_v17 = vld [vmem:[%s4524_s1 + $0x438] sm:$0xff]  }
  0x56   : > { %3215 = vmatprep.subr.bf16.mxu0 %v3571_v20  ;;  %v3639_v20 = vld [vmem:[%s4524_s1 + $0x470] sm:$0xff]  }
  0x57   : > { %3236 = vmatpush3.bf16.msra.mxu1 %v3570_v19  ;;  %v3638_v19 = vld [vmem:[%s4524_s1 + $0x4b8] sm:$0xff]  }
  0x58   : > { %3237 = vmatprep.subr.bf16.mxu1 %v3573_v22  ;;  %v3641_v22 = vld [vmem:[%s4524_s1 + $0x4f0] sm:$0xff]  }
  0x59   : > { %3216 = vmatpush3.bf16.msra.mxu0 %v3572_v21  ;;  %v3640_v21 = vld [vmem:[%s4524_s1 + $0x430] sm:$0xff]  }
  0x5a   : > { %3217 = vmatprep.subr.bf16.mxu0 %v3575_v24  ;;  %v3643_v24 = vld [vmem:[%s4524_s1 + $0x468] sm:$0xff]  }
  0x5b   : > { %3238 = vmatpush3.bf16.msra.mxu1 %v3574_v23  ;;  %v3642_v23 = vld [vmem:[%s4524_s1 + $0x4b0] sm:$0xff]  }
  0x5c   : > { %3239 = vmatprep.subr.bf16.mxu1 %v3577_v26  ;;  %v3645_v26 = vld [vmem:[%s4524_s1 + $0x4e8] sm:$0xff]  }
  0x5d   : > { %3218 = vmatpush3.bf16.msra.mxu0 %v3576_v25  ;;  %v3644_v25 = vld [vmem:[%s4524_s1 + $0x428] sm:$0xff]  }
  0x5e   : > { %3219 = vmatprep.subr.bf16.mxu0 %v3579_v28  ;;  %v3647_v28 = vld [vmem:[%s4524_s1 + $0x460] sm:$0xff]  }
  0x5f   : > { %3240 = vmatpush3.bf16.msra.mxu1 %v3578_v27  ;;  %v3646_v27 = vld [vmem:[%s4524_s1 + $0x4a8] sm:$0xff]  }
  0x60   : > { %3241 = vmatprep.subr.bf16.mxu1 %v3581_v30  ;;  %v3649_v30 = vld [vmem:[%s4524_s1 + $0x4e0] sm:$0xff]  }
  0x61   : > { %3220 = vmatpush3.bf16.msra.mxu0 %v3580_v29  ;;  %v3648_v29 = vld [vmem:[%s4524_s1 + $0x420] sm:$0xff]  }
  0x62   : > { %3221 = vmatprep.subr.bf16.mxu0 %v3583_v32  ;;  %v3651_v32 = vld [vmem:[%s4524_s1 + $0x458] sm:$0xff]  }
  0x63   : > { %3242 = vmatpush3.bf16.msra.mxu1 %v3582_v31  ;;  %v3650_v31 = vld [vmem:[%s4524_s1 + $0x4a0] sm:$0xff]  }
  0x64   : > { %3243 = vmatprep.subr.bf16.mxu1 %v3585_v34  ;;  %v3653_v34 = vld [vmem:[%s4524_s1 + $0x4d8] sm:$0xff]  }
  0x65   : > { %3222 = vmatpush3.bf16.msra.mxu0 %v3584_v33  ;;  %v3652_v33 = vld [vmem:[%s4524_s1 + $0x418] sm:$0xff]  }
  0x66   : > { %3223 = vmatprep.subr.bf16.mxu0 %v3587_v36  ;;  %v3655_v36 = vld [vmem:[%s4524_s1 + $0x450] sm:$0xff]  }
  0x67   : > { %3244 = vmatpush3.bf16.msra.mxu1 %v3586_v35  ;;  %v3654_v35 = vld [vmem:[%s4524_s1 + $0x498] sm:$0xff]  }
  0x68   : > { %3245 = vmatprep.subr.bf16.mxu1 %v3589_v38  ;;  %v3657_v38 = vld [vmem:[%s4524_s1 + $0x4d0] sm:$0xff]  }
  0x69   : > { %3224 = vmatpush3.bf16.msra.mxu0 %v3588_v37  ;;  %v3656_v37 = vld [vmem:[%s4524_s1 + $0x410] sm:$0xff]  }
  0x6a   : > { %3253 = vmatprep.subr.bf16.mxu0 %v3594_v42  ;;  %v3661_v42 = vld [vmem:[%s4524_s1 + $0x4c8] sm:$0xff]  }
  0x6b   : > { %3246 = vmatpush3.bf16.msra.mxu1 %v3593_v41  ;;  %v3660_v41 = vld [vmem:[%s4524_s1 + $0x408] sm:$0xff]  }
  0x6c   : > { %2242 = vmatmul.mubr.bf16.vlgmr.msra.gmra.mxu0 %v3590_v39  ;;  %3275 = vmatprep.subr.bf16.mxu1 %v3599_v46  ;;  %v3658_v39 = vld [vmem:[%s4524_s1 + $0x490] sm:$0xff]   ;;  %v3665_v46 = vld [vmem:[%s4524_s1 + $0x4c0] sm:$0xff]  }
  0x6d   : > { %3254 = vmatpush3.bf16.msra.mxu0 %v3598_v45  ;;  %2323 = vmatprep.mubr.bf16.mxu0 %v3630_v12  ;;  %v3664_v45 = vld [vmem:[%s4524_s1 + $0x400] sm:$0xff]   ;;  %v3697_v12 = vld [vmem:[%s4524_s1 + $0x548] sm:$0xff]  }
  0x6e   : > { %2283 = vmatmul.mubr.bf16.vlgmr.msra.gmra.mxu1 %v3595_v43  ;;  %3255 = vmatprep.subr.bf16.mxu0 %v3601_v48  ;;  %v3662_v43 = vld [vmem:[%s4524_s1 + $0x488] sm:$0xff]  }
  0x6f   : > { %3276 = vmatpush3.bf16.msra.mxu1 %v3600_v47  ;;  %2364 = vmatprep.mubr.bf16.mxu1 %v3635_v16  ;;  %v3666_v47 = vld [vmem:[%s3889_s22 + $0x40] ss:$100 sps:$4 sm:$0xff]  }
  0x70   : > { %3277 = vmatprep.subr.bf16.mxu1 %v3603_v50  ;;  %v3668_v48 = vld [vmem:[%s3889_s22 + $0x44] ss:$100 sps:$4 sm:$0xff]   ;;  %v3670_v50 = vld [vmem:[%s4524_s1 + $0x578] sm:$0xff]  }
  0x71   : > { %3256 = vmatpush3.bf16.msra.mxu0 %v3602_v49  ;;  %v3669_v49 = vld [vmem:[%s4524_s1 + $0x480] sm:$0xff]  }
  0x72   : > { %3257 = vmatprep.subr.bf16.mxu0 %v3605_v52  ;;  %v3673_v52 = vld [vmem:[%s3889_s22 + $0x4c] ss:$100 sps:$4 sm:$0xff]   ;;  %v3701_v16 = vld [vmem:[%s4524_s1 + $0x540] sm:$0xff]  }
  0x73   : > { %3278 = vmatpush3.bf16.msra.mxu1 %v3604_v51  ;;  %v3671_v51 = vld [vmem:[%s3889_s22 + $0x48] ss:$100 sps:$4 sm:$0xff]  }
  0x74   : > { %3279 = vmatprep.subr.bf16.mxu1 %v3607_v54  ;;  %v3675_v54 = vld [vmem:[%s4524_s1 + $0x5f8] sm:$0xff]  }
  0x75   : > { %3258 = vmatpush3.bf16.msra.mxu0 %v3606_v53  ;;  %v3674_v53 = vld [vmem:[%s4524_s1 + $0x538] sm:$0xff]  }
  0x76   : > { %3259 = vmatprep.subr.bf16.mxu0 %v3609_v56  ;;  %v3677_v56 = vld [vmem:[%s4524_s1 + $0x570] sm:$0xff]  }
  0x77   : > { %3280 = vmatpush3.bf16.msra.mxu1 %v3608_v55  ;;  %v3676_v55 = vld [vmem:[%s4524_s1 + $0x5b8] sm:$0xff]  }
  0x78   : > { %3281 = vmatprep.subr.bf16.mxu1 %v3611_v58  ;;  %v3679_v58 = vld [vmem:[%s4524_s1 + $0x5f0] sm:$0xff]  }
  0x79   : > { %3260 = vmatpush3.bf16.msra.mxu0 %v3610_v57  ;;  %v3678_v57 = vld [vmem:[%s4524_s1 + $0x530] sm:$0xff]  }
  0x7a   : > { %3261 = vmatprep.subr.bf16.mxu0 %v3613_v60  ;;  %v3681_v60 = vld [vmem:[%s4524_s1 + $0x568] sm:$0xff]  }
  0x7b   : > { %3282 = vmatpush3.bf16.msra.mxu1 %v3612_v59  ;;  %v3680_v59 = vld [vmem:[%s4524_s1 + $0x5b0] sm:$0xff]  }
  0x7c   : > { %3283 = vmatprep.subr.bf16.mxu1 %v3615_v62  ;;  %v3683_v62 = vld [vmem:[%s4524_s1 + $0x5e8] sm:$0xff]  }
  0x7d   : > { %3262 = vmatpush3.bf16.msra.mxu0 %v3614_v61  ;;  %v3682_v61 = vld [vmem:[%s4524_s1 + $0x528] sm:$0xff]  }
  0x7e   : > { %3263 = vmatprep.subr.bf16.mxu0 %v3617_v0  ;;  %v3685_v0 = vld [vmem:[%s4524_s1 + $0x560] sm:$0xff]  }
  0x7f   : > { %3284 = vmatpush3.bf16.msra.mxu1 %v3616_v63  ;;  %v3684_v63 = vld [vmem:[%s4524_s1 + $0x5a8] sm:$0xff]  }
  0x80   : > { %3285 = vmatprep.subr.bf16.mxu1 %v3619_v2  ;;  %v3687_v2 = vld [vmem:[%s4524_s1 + $0x5e0] sm:$0xff]  }
  0x81   : > { %3264 = vmatpush3.bf16.msra.mxu0 %v3618_v1  ;;  %v3686_v1 = vld [vmem:[%s4524_s1 + $0x520] sm:$0xff]  }
  0x82   : > { %3265 = vmatprep.subr.bf16.mxu0 %v3621_v4  ;;  %v3689_v4 = vld [vmem:[%s4524_s1 + $0x558] sm:$0xff]  }
  0x83   : > { %3286 = vmatpush3.bf16.msra.mxu1 %v3620_v3  ;;  %v3688_v3 = vld [vmem:[%s4524_s1 + $0x5a0] sm:$0xff]  }
  0x84   : > { %3287 = vmatprep.subr.bf16.mxu1 %v3623_v6  ;;  %v3691_v6 = vld [vmem:[%s4524_s1 + $0x5d8] sm:$0xff]  }
  0x85   : > { %3266 = vmatpush3.bf16.msra.mxu0 %v3622_v5  ;;  %v3690_v5 = vld [vmem:[%s4524_s1 + $0x518] sm:$0xff]  }
  0x86   : > { %3267 = vmatprep.subr.bf16.mxu0 %v3625_v8  ;;  %v3693_v8 = vld [vmem:[%s4524_s1 + $0x550] sm:$0xff]  }
  0x87   : > { %3288 = vmatpush3.bf16.msra.mxu1 %v3624_v7  ;;  %v3692_v7 = vld [vmem:[%s4524_s1 + $0x598] sm:$0xff]  }
  0x88   : > { %3289 = vmatprep.subr.bf16.mxu1 %v3627_v10  ;;  %v3695_v10 = vld [vmem:[%s4524_s1 + $0x5d0] sm:$0xff]  }
  0x89   : > { %3268 = vmatpush3.bf16.msra.mxu0 %v3626_v9  ;;  %v3694_v9 = vld [vmem:[%s4524_s1 + $0x510] sm:$0xff]  }
  0x8a   : > { %3297 = vmatprep.subr.bf16.mxu0 %v3632_v14  ;;  %v3699_v14 = vld [vmem:[%s4524_s1 + $0x5c8] sm:$0xff]  }
  0x8b   : > { %3290 = vmatpush3.bf16.msra.mxu1 %v3631_v13  ;;  %v3698_v13 = vld [vmem:[%s4524_s1 + $0x508] sm:$0xff]  }
  0x8c   : > { %2324 = vmatmul.mubr.bf16.vlgmr.msra.gmra.mxu0 %v3628_v11  ;;  %3319 = vmatprep.subr.bf16.mxu1 %v3637_v18  ;;  %v3696_v11 = vld [vmem:[%s4524_s1 + $0x590] sm:$0xff]   ;;  %v3703_v18 = vld [vmem:[%s4524_s1 + $0x5c0] sm:$0xff]  }
  0x8d   : > { %3298 = vmatpush3.bf16.msra.mxu0 %v3636_v17  ;;  %2405 = vmatprep.mubr.bf16.mxu0 %v3668_v48  ;;  %v3702_v17 = vld [vmem:[%s4524_s1 + $0x500] sm:$0xff]  }
  0x8e   : > { %2365 = vmatmul.mubr.bf16.vlgmr.msra.gmra.mxu1 %v3633_v15  ;;  %3299 = vmatprep.subr.bf16.mxu0 %v3639_v20  ;;  %v3700_v15 = vld [vmem:[%s4524_s1 + $0x588] sm:$0xff]   ;;  %v3706_v20 = vld [vmem:[%s3889_s22 + $0x54] ss:$100 sps:$4 sm:$0xff]  }
  0x8f   : > { %3320 = vmatpush3.bf16.msra.mxu1 %v3638_v19  ;;  %2446 = vmatprep.mubr.bf16.mxu1 %v3673_v52  ;;  %v3704_v19 = vld [vmem:[%s3889_s22 + $0x50] ss:$100 sps:$4 sm:$0xff]  }
  0x90   : > { %3321 = vmatprep.subr.bf16.mxu1 %v3641_v22  ;;  %v3744_v22 = vmov 0.0  }
  0x91   : > { %3300 = vmatpush3.bf16.msra.mxu0 %v3640_v21  ;;  %v3707_v21 = vld [vmem:[%s4524_s1 + $0x580] sm:$0xff]  }
  0x92   : > { %3301 = vmatprep.subr.bf16.mxu0 %v3643_v24  ;;  %v3710_v24 = vld [vmem:[%s3889_s22 + $0x5c] ss:$100 sps:$4 sm:$0xff]  }
  0x93   : > { %3322 = vmatpush3.bf16.msra.mxu1 %v3642_v23  ;;  %v3708_v23 = vld [vmem:[%s3889_s22 + $0x58] ss:$100 sps:$4 sm:$0xff]  }
  0x94   : > { %3323 = vmatprep.subr.bf16.mxu1 %v3645_v26  ;;  %v3712_v26 = vld [vmem:[%s4524_s1 + $0x630] sm:$0xff]  }
  0x95   : > { %3302 = vmatpush3.bf16.msra.mxu0 %v3644_v25  ;;  %v3711_v25 = vld [vmem:[%s4524_s1 + $0x638] sm:$0xff]  }
  0x96   : > { %3303 = vmatprep.subr.bf16.mxu0 %v3647_v28  ;;  %v3714_v28 = vld [vmem:[%s4524_s1 + $0x620] sm:$0xff]  }
  0x97   : > { %3324 = vmatpush3.bf16.msra.mxu1 %v3646_v27  ;;  %v3713_v27 = vld [vmem:[%s4524_s1 + $0x628] sm:$0xff]  }
  0x98   : > { %3325 = vmatprep.subr.bf16.mxu1 %v3649_v30  ;;  %v3716_v30 = vld [vmem:[%s4524_s1 + $0x610] sm:$0xff]  }
  0x99   : > { %3304 = vmatpush3.bf16.msra.mxu0 %v3648_v29  ;;  %v3715_v29 = vld [vmem:[%s4524_s1 + $0x618] sm:$0xff]  }
  0x9a   : > { %3305 = vmatprep.subr.bf16.mxu0 %v3651_v32  ;;  %v3718_v32 = vld [vmem:[%s4524_s1 + $0x600] sm:$0xff]  }
  0x9b   : > { %3326 = vmatpush3.bf16.msra.mxu1 %v3650_v31  ;;  %v3717_v31 = vld [vmem:[%s4524_s1 + $0x608] sm:$0xff]  }
  0x9c   : > { %3327 = vmatprep.subr.bf16.mxu1 %v3653_v34  ;;  %v3720_v34 = vld [vmem:[%s4526_s3 + $0x38] sm:$0xff]  }
  0x9d   : > { %3306 = vmatpush3.bf16.msra.mxu0 %v3652_v33  ;;  %v3719_v33 = vld [vmem:[%s3889_s22 + $0x60] ss:$100 sps:$4 sm:$0xff]  }
  0x9e   : > { %3307 = vmatprep.subr.bf16.mxu0 %v3655_v36  ;;  %v3722_v36 = vld [vmem:[%s4526_s3 + $0x28] sm:$0xff]  }
  0x9f   : > { %3328 = vmatpush3.bf16.msra.mxu1 %v3654_v35  ;;  %v3721_v35 = vld [vmem:[%s4526_s3 + $0x30] sm:$0xff]  }
  0xa0   : > { %3329 = vmatprep.subr.bf16.mxu1 %v3657_v38  ;;  %v3724_v38 = vld [vmem:[%s4526_s3 + $0x18] sm:$0xff]  }
  0xa1   : > { %3308 = vmatpush3.bf16.msra.mxu0 %v3656_v37  ;;  %v3723_v37 = vld [vmem:[%s4526_s3 + $0x20] sm:$0xff]  }
  0xa2   : > { %3309 = vmatprep.subr.bf16.mxu0 %v3659_v40  ;;  %v3726_v40 = vld [vmem:[%s4526_s3 + $0x8] sm:$0xff]  }
  0xa3   : > { %3330 = vmatpush3.bf16.msra.mxu1 %v3658_v39  ;;  %v3725_v39 = vld [vmem:[%s4526_s3 + $0x10] sm:$0xff]  }
  0xa4   : > { %3331 = vmatprep.subr.bf16.mxu1 %v3661_v42  ;;  %v3728_v42 = vld [vmem:[%s4528_s5 + $0x38] sm:$0xff]  }
  0xa5   : > { %3310 = vmatpush3.bf16.msra.mxu0 %v3660_v41  ;;  %v3727_v41 = vld [vmem:[%s4526_s3] sm:$0xff]  }
  0xa6   : > { %3311 = vmatprep.subr.bf16.mxu0 %v3663_v44  ;;  %v3730_v44 = vld [vmem:[%s4528_s5 + $0x28] sm:$0xff]  }
  0xa7   : > { %3332 = vmatpush3.bf16.msra.mxu1 %v3662_v43  ;;  %v3729_v43 = vld [vmem:[%s4528_s5 + $0x30] sm:$0xff]  }
  0xa8   : > { %3333 = vmatprep.subr.bf16.mxu1 %v3665_v46  ;;  %v3732_v46 = vld [vmem:[%s4528_s5 + $0x18] sm:$0xff]  }
  0xa9   : > { %3312 = vmatpush3.bf16.msra.mxu0 %v3664_v45  ;;  %v3731_v45 = vld [vmem:[%s4528_s5 + $0x20] sm:$0xff]  }
  0xaa   : > { %3341 = vmatprep.subr.bf16.mxu0 %v3670_v50 }
  0xab   : > { %3334 = vmatpush3.bf16.msra.mxu1 %v3669_v49 }
  0xac   : > { %2406 = vmatmul.mubr.bf16.vlgmr.msra.gmra.mxu0 %v3666_v47  ;;  %3363 = vmatprep.subr.bf16.mxu1 %v3675_v54 }
  0xad   : > { %3342 = vmatpush3.bf16.msra.mxu0 %v3674_v53  ;;  %2487 = vmatprep.mubr.bf16.mxu0 %v3706_v20 }
  0xae   : > { %2447 = vmatmul.mubr.bf16.vlgmr.msra.gmra.mxu1 %v3671_v51  ;;  %3343 = vmatprep.subr.bf16.mxu0 %v3677_v56 }
  0xaf   : > { %3364 = vmatpush3.bf16.msra.mxu1 %v3676_v55  ;;  %2528 = vmatprep.mubr.bf16.mxu1 %v3710_v24 }
  0xb0   : > { %3365 = vmatprep.subr.bf16.mxu1 %v3679_v58 }
  0xb1   : > { %3344 = vmatpush3.bf16.msra.mxu0 %v3678_v57 }
  0xb2   : > { %3345 = vmatprep.subr.bf16.mxu0 %v3681_v60 }
  0xb3   : > { %3366 = vmatpush3.bf16.msra.mxu1 %v3680_v59 }
  0xb4   : > { %3367 = vmatprep.subr.bf16.mxu1 %v3683_v62 }
  0xb5   : > { %3346 = vmatpush3.bf16.msra.mxu0 %v3682_v61 }
  0xb6   : > { %3347 = vmatprep.subr.bf16.mxu0 %v3685_v0 }
  0xb7   : > { %3368 = vmatpush3.bf16.msra.mxu1 %v3684_v63 }
  0xb8   : > { %3369 = vmatprep.subr.bf16.mxu1 %v3687_v2 }
  0xb9   : > { %3348 = vmatpush3.bf16.msra.mxu0 %v3686_v1 }
  0xba   : > { %3349 = vmatprep.subr.bf16.mxu0 %v3689_v4 }
  0xbb   : > { %3370 = vmatpush3.bf16.msra.mxu1 %v3688_v3 }
  0xbc   : > { %3371 = vmatprep.subr.bf16.mxu1 %v3691_v6 }
  0xbd   : > { %3350 = vmatpush3.bf16.msra.mxu0 %v3690_v5 }
  0xbe   : > { %3351 = vmatprep.subr.bf16.mxu0 %v3693_v8 }
  0xbf   : > { %3372 = vmatpush3.bf16.msra.mxu1 %v3692_v7 }
  0xc0   : > { %3373 = vmatprep.subr.bf16.mxu1 %v3695_v10 }
  0xc1   : > { %3352 = vmatpush3.bf16.msra.mxu0 %v3694_v9 }
  0xc2   : > { %3353 = vmatprep.subr.bf16.mxu0 %v3697_v12 }
  0xc3   : > { %3374 = vmatpush3.bf16.msra.mxu1 %v3696_v11 }
  0xc4   : > { %3375 = vmatprep.subr.bf16.mxu1 %v3699_v14 }
  0xc5   : > { %3354 = vmatpush3.bf16.msra.mxu0 %v3698_v13  ;;  %v2875_v13 = vld [vmem:[%s4525_s2] ss:$0 sm:$0xff] }
  0xc6   : > { %3355 = vmatprep.subr.bf16.mxu0 %v3701_v16 }
  0xc7   : > { %3376 = vmatpush3.bf16.msra.mxu1 %v3700_v15 }
  0xc8   : > { %3377 = vmatprep.subr.bf16.mxu1 %v3703_v18 }
  0xc9   : > { %3356 = vmatpush3.bf16.msra.mxu0 %v3702_v17 }
  0xca   : > { %3412 = vmatprep.subr.bf16.mxu0 %v3744_v22 }
  0xcb   : > { %3378 = vmatpush3.bf16.msra.mxu1 %v3707_v21 }
  0xcc   : > { %2488 = vmatmul.mubr.bf16.vlgmr.msra.gmra.mxu0 %v3704_v19  ;;  %3432 = vmatprep.subr.bf16.mxu1 %v3744_v22 }
  0xcd   : > { %3428 = vmatprep.mubr.msk.bf16.mxu0 %vm3745_vm0, %v3744_v22  ;;  %3413 = vmatpush3.bf16.msra.mxu0 %v3711_v25 }
  0xce   : > { %2529 = vmatmul.mubr.bf16.vlgmr.msra.gmra.mxu1 %v3708_v23  ;;  %3414 = vmatprep.subr.bf16.mxu0 %v3744_v22 }
  0xcf   : > { %3448 = vmatprep.mubr.msk.bf16.mxu1 %vm3745_vm0, %v3744_v22  ;;  %3433 = vmatpush3.bf16.msra.mxu1 %v3720_v34 }
  0xd0   : > { %3434 = vmatprep.subr.bf16.mxu1 %v3744_v22 }
  0xd1   : > { %3415 = vmatpush3.bf16.msra.mxu0 %v3712_v26 }
  0xd2   : > { %3416 = vmatprep.subr.bf16.mxu0 %v3744_v22 }
  0xd3   : > { %3435 = vmatpush3.bf16.msra.mxu1 %v3721_v35 }
  0xd4   : > { %3436 = vmatprep.subr.bf16.mxu1 %v3744_v22 }
  0xd5   : > { %3417 = vmatpush3.bf16.msra.mxu0 %v3713_v27 }
  0xd6   : > { %3418 = vmatprep.subr.bf16.mxu0 %v3744_v22 }
  0xd7   : > { %3437 = vmatpush3.bf16.msra.mxu1 %v3722_v36 }
  0xd8   : > { %3438 = vmatprep.subr.bf16.mxu1 %v3744_v22 }
  0xd9   : > { %3419 = vmatpush3.bf16.msra.mxu0 %v3714_v28 }
  0xda   : > { %3420 = vmatprep.subr.bf16.mxu0 %v3744_v22 }
  0xdb   : > { %3439 = vmatpush3.bf16.msra.mxu1 %v3723_v37 }
  0xdc   : > { %3440 = vmatprep.subr.bf16.mxu1 %v3744_v22 }
  0xdd   : > { %3421 = vmatpush3.bf16.msra.mxu0 %v3715_v29 }
  0xde   : > { %3422 = vmatprep.subr.bf16.mxu0 %v3744_v22 }
  0xdf   : > { %3441 = vmatpush3.bf16.msra.mxu1 %v3724_v38 }
  0xe0   : > { %3442 = vmatprep.subr.bf16.mxu1 %v3744_v22 }
  0xe1   : > { %3423 = vmatpush3.bf16.msra.mxu0 %v3716_v30 }
  0xe2   : > { %3424 = vmatprep.subr.bf16.mxu0 %v3744_v22 }
  0xe3   : > { %3443 = vmatpush3.bf16.msra.mxu1 %v3725_v39 }
  0xe4   : > { %3444 = vmatprep.subr.bf16.mxu1 %v3744_v22 }
  0xe5   : > { %3425 = vmatpush3.bf16.msra.mxu0 %v3717_v31 }
  0xe6   : > { %3426 = vmatprep.subr.bf16.mxu0 %v3744_v22 }
  0xe7   : > { %3445 = vmatpush3.bf16.msra.mxu1 %v3726_v40 }
  0xe8   : > { %3446 = vmatprep.subr.bf16.mxu1 %v3744_v22 }
  0xe9   : > { %3427 = vmatpush3.bf16.msra.mxu0 %v3718_v32 }
  0xea   : > { %3452 = vmatprep.subr.bf16.mxu0 %v3744_v22 }
  0xeb   : > { %3447 = vmatpush3.bf16.msra.mxu1 %v3727_v41 }
  0xec   : > { %3429 = vmatmul.mubr.bf16.vlgmr.msra.gmra.mxu0 %v3719_v33  ;;  %v3137_v47 = vpop.f32.mrf.mxu0 }
  0xed   : > { %3468 = vmatprep.mubr.msk.bf16.mxu0 %vm3745_vm0, %v3744_v22  ;;  %3453 = vmatpush3.bf16.msra.mxu0 %v3728_v42 }
  0xee   : > { %3454 = vmatprep.subr.bf16.mxu0 %v3744_v22  ;;  %v3138_v48 = vpop.f32.mrf.mxu0  ;;  %v3159_v49 = vpop.f32.mrf.mxu1 }
  0xef   : > { %v3139_v12 = vadd.f32 %v3138_v48, %v3137_v47 }
  0xf0   : > { %v3140_v50 = vpop.f32.mrf.mxu0  ;;  %v3160_v51 = vpop.f32.mrf.mxu1 }
  0xf1   : > { %3455 = vmatpush3.bf16.msra.mxu0 %v3729_v43  ;;  %v2080_v18 = vadd.f32 %v3139_v12, %v2875_v13  ;;  %v3161_v19 = vadd.f32 %v3160_v51, %v3159_v49 }
  0xf2   : > { %3456 = vmatprep.subr.bf16.mxu0 %v3744_v22  ;;  %v3141_v52 = vpop.f32.mrf.mxu0  ;;  %v3162_v53 = vpop.f32.mrf.mxu1 }
  0xf3   : > { %v3142_v16 = vadd.f32 %v3141_v52, %v3140_v50  ;;  %v2121_v27 = vadd.f32 %v3161_v19, %v2080_v18 }
  0xf4   : > { %v3163_v55 = vpop.f32.mrf.mxu1 }
  0xf5   : > { %3457 = vmatpush3.bf16.msra.mxu0 %v3730_v44  ;;  %v2083_v21 = vadd.f32 %v3142_v16, %v2875_v13  ;;  %v3164_v23 = vadd.f32 %v3163_v55, %v3162_v53 }
  0xf6   : > { %3458 = vmatprep.subr.bf16.mxu0 %v3744_v22 }
  0xf7   : > { %v2124_v29 = vadd.f32 %v3164_v23, %v2083_v21 }
  0xf9   : > { %3459 = vmatpush3.bf16.msra.mxu0 %v3731_v45 }
  0xfa   : > { %3460 = vmatprep.subr.bf16.mxu0 %v3744_v22 }
  0xfd   : > { %3461 = vmatpush3.bf16.msra.mxu0 %v3732_v46 }
  0xfe   : > { %3462 = vmatprep.subr.bf16.mxu0 %v3744_v22 }
 0x10c   : > { %v3181_v54 = vpop.f32.mrf.mxu0 }
 0x10e   : > { %v3182_v56 = vpop.f32.mrf.mxu0  ;;  %v3203_v57 = vpop.f32.mrf.mxu1 }
 0x10f   : > { %v3183_v24 = vadd.f32 %v3182_v56, %v3181_v54 }
 0x110   : > { %v3184_v58 = vpop.f32.mrf.mxu0  ;;  %v3204_v59 = vpop.f32.mrf.mxu1 }
 0x111   : > { %v2162_v30 = vadd.f32 %v3183_v24, %v2121_v27  ;;  %v3205_v31 = vadd.f32 %v3204_v59, %v3203_v57  ;;  %v3733_v27 = vld [vmem:[%s4528_s5 + $0x10] sm:$0xff]  }
 0x112   : > { %v3185_v60 = vpop.f32.mrf.mxu0  ;;  %v3206_v61 = vpop.f32.mrf.mxu1  ;;  %3463 = vmatpush3.bf16.msra.mxu0 %v3733_v27 }
 0x113   : > { %v3186_v28 = vadd.f32 %v3185_v60, %v3184_v58  ;;  %v2203_v37 = vadd.f32 %v3205_v31, %v2162_v30  ;;  %3464 = vmatprep.subr.bf16.mxu0 %v3744_v22  ;;  %v3101_v30 = vld [vmem:[%s4527_s4] ss:$0 sm:$0xff] }
 0x114   : > { %v3207_v63 = vpop.f32.mrf.mxu1 }
 0x115   : > { %v2165_v34 = vadd.f32 %v3186_v28, %v2124_v29  ;;  %v3208_v35 = vadd.f32 %v3207_v63, %v3206_v61  ;;  %v3734_v28 = vld [vmem:[%s4528_s5 + $0x8] sm:$0xff]   ;;  %v3735_v29 = vld [vmem:[%s4528_s5] sm:$0xff]  }
 0x116   : > { %3465 = vmatpush3.bf16.msra.mxu0 %v3734_v28 }
 0x117   : > { %v2206_v41 = vadd.f32 %v3208_v35, %v2165_v34  ;;  %3466 = vmatprep.subr.bf16.mxu0 %v3744_v22  ;;  %v3110_v22 = vld [vmem:[%s4529_s6] ss:$0 sm:$0xff] }
 0x11a   : > { %3467 = vmatpush3.bf16.msra.mxu0 %v3735_v29 }
 0x12c   : > { %v3225_v62 = vpop.f32.mrf.mxu0 }
 0x12e   : > { %v3226_v0 = vpop.f32.mrf.mxu0  ;;  %v3247_v1 = vpop.f32.mrf.mxu1 }
 0x12f   : > { %v3227_v36 = vadd.f32 %v3226_v0, %v3225_v62 }
 0x130   : > { %v3228_v2 = vpop.f32.mrf.mxu0  ;;  %v3248_v3 = vpop.f32.mrf.mxu1 }
 0x131   : > { %v2244_v42 = vadd.f32 %v3227_v36, %v2203_v37  ;;  %v3249_v43 = vadd.f32 %v3248_v3, %v3247_v1 }
 0x132   : > { %v3229_v4 = vpop.f32.mrf.mxu0  ;;  %v3250_v5 = vpop.f32.mrf.mxu1 }
 0x133   : > { %v3230_v38 = vadd.f32 %v3229_v4, %v3228_v2  ;;  %v2285_v49 = vadd.f32 %v3249_v43, %v2244_v42 }
 0x134   : > { %v3251_v7 = vpop.f32.mrf.mxu1 }
 0x135   : > { %v2247_v45 = vadd.f32 %v3230_v38, %v2206_v41  ;;  %v3252_v46 = vadd.f32 %v3251_v7, %v3250_v5 }
 0x137   : > { %v2288_v53 = vadd.f32 %v3252_v46, %v2247_v45 }
 0x14c   : > { %v3269_v6 = vpop.f32.mrf.mxu0 }
 0x14e   : > { %v3270_v8 = vpop.f32.mrf.mxu0  ;;  %v3291_v9 = vpop.f32.mrf.mxu1 }
 0x14f   : > { %v3271_v47 = vadd.f32 %v3270_v8, %v3269_v6 }
 0x150   : > { %v3272_v10 = vpop.f32.mrf.mxu0  ;;  %v3292_v11 = vpop.f32.mrf.mxu1 }
 0x151   : > { %v2326_v54 = vadd.f32 %v3271_v47, %v2285_v49  ;;  %v3293_v55 = vadd.f32 %v3292_v11, %v3291_v9 }
 0x152   : > { %v3273_v14 = vpop.f32.mrf.mxu0  ;;  %v3294_v15 = vpop.f32.mrf.mxu1 }
 0x153   : > { %v3274_v50 = vadd.f32 %v3273_v14, %v3272_v10  ;;  %v2367_v61 = vadd.f32 %v3293_v55, %v2326_v54 }
 0x154   : > { %v3295_v20 = vpop.f32.mrf.mxu1 }
 0x155   : > { %v2329_v56 = vadd.f32 %v3274_v50, %v2288_v53  ;;  %v3296_v57 = vadd.f32 %v3295_v20, %v3294_v15 }
 0x157   : > { %v2370_v63 = vadd.f32 %v3296_v57, %v2329_v56 }
 0x16c   : > { %v3313_v17 = vpop.f32.mrf.mxu0 }
 0x16e   : > { %v3314_v25 = vpop.f32.mrf.mxu0  ;;  %v3335_v26 = vpop.f32.mrf.mxu1 }
 0x16f   : > { %v3315_v58 = vadd.f32 %v3314_v25, %v3313_v17 }
 0x170   : > { %v3316_v32 = vpop.f32.mrf.mxu0  ;;  %v3336_v33 = vpop.f32.mrf.mxu1 }
 0x171   : > { %v2408_v0 = vadd.f32 %v3315_v58, %v2367_v61  ;;  %v3337_v1 = vadd.f32 %v3336_v33, %v3335_v26 }
 0x172   : > { %v3317_v39 = vpop.f32.mrf.mxu0  ;;  %v3338_v40 = vpop.f32.mrf.mxu1 }
 0x173   : > { %v3318_v62 = vadd.f32 %v3317_v39, %v3316_v32  ;;  %v2449_v7 = vadd.f32 %v3337_v1, %v2408_v0 }
 0x174   : > { %v3339_v48 = vpop.f32.mrf.mxu1 }
 0x175   : > { %v2411_v4 = vadd.f32 %v3318_v62, %v2370_v63  ;;  %v3340_v5 = vadd.f32 %v3339_v48, %v3338_v40 }
 0x177   : > { %v2452_v12 = vadd.f32 %v3340_v5, %v2411_v4 }
 0x18c   : > { %v3357_v44 = vpop.f32.mrf.mxu0 }
 0x18e   : > { %v3358_v51 = vpop.f32.mrf.mxu0  ;;  %v3379_v52 = vpop.f32.mrf.mxu1 }
 0x18f   : > { %v3359_v6 = vadd.f32 %v3358_v51, %v3357_v44 }
 0x190   : > { %v3360_v59 = vpop.f32.mrf.mxu0  ;;  %v3380_v60 = vpop.f32.mrf.mxu1 }
 0x191   : > { %v2490_v9 = vadd.f32 %v3359_v6, %v2449_v7  ;;  %v3381_v11 = vadd.f32 %v3380_v60, %v3379_v52 }
 0x192   : > { %v3361_v2 = vpop.f32.mrf.mxu0  ;;  %v3382_v3 = vpop.f32.mrf.mxu1 }
 0x193   : > { %v3362_v8 = vadd.f32 %v3361_v2, %v3360_v59  ;;  %v2531_v16 = vadd.f32 %v3381_v11, %v2490_v9 }
 0x194   : > { %v3383_v10 = vpop.f32.mrf.mxu1 }
 0x195   : > { %v2493_v13 = vadd.f32 %v3362_v8, %v2452_v12  ;;  %v3384_v14 = vadd.f32 %v3383_v10, %v3382_v3 }
 0x197   : > { %v2534_v19 = vadd.f32 %v3384_v14, %v2493_v13 }
 0x1ac   : > { %v2571_v15 = vpop.f32.mrf.mxu0 }
 0x1ad   : > { %v2572_v18 = vadd.f32 %v2571_v15, %v2531_v16 }
 0x1ae   : > { %v3430_v17 = vpop.f32.mrf.mxu0 }
 0x1af   : > { %v2578_v24 = vmax.f32 %v2572_v18, 0.0 }
 0x1b0   : > { %v2574_v20 = vpop.f32.mrf.mxu0 }
 0x1b1   : > { %v2575_v21 = vadd.f32 %v2574_v20, %v2534_v19 }
 0x1b2   : > { %v3431_v23 = vpop.f32.mrf.mxu0 }
 0x1b3   : > { %v2579_v25 = vmax.f32 %v2575_v21, 0.0 }
 0x1b5   : > { %v2580_v26 = vpack.c.bf16 %v2579_v25, %v2578_v24 }
 0x1b7   : > { %3449 = vmatmul.mubr.bf16.vlgmr.msra.gmra.mxu1 %v2580_v26 }
 0x277   : > { %v2686_v31 = vpop.f32.mrf.mxu1 }
 0x278   : > { %v2687_v33 = vadd.f32 %v3101_v30, %v2686_v31 }
 0x279   : > { %v3450_v32 = vpop.f32.mrf.mxu1 }
 0x27a   : > { %v2693_v37 = vmax.f32 %v2687_v33, 0.0 }
 0x27b   : > { %v2689_v34 = vpop.f32.mrf.mxu1 }
 0x27c   : > { %v2690_v35 = vadd.f32 %v3101_v30, %v2689_v34 }
 0x27d   : > { %v3451_v36 = vpop.f32.mrf.mxu1 }
 0x27e   : > { %v2694_v38 = vmax.f32 %v2690_v35, 0.0 }
 0x280   : > { %v2695_v39 = vpack.c.bf16 %v2694_v38, %v2693_v37 }
 0x282   : > { %3469 = vmatmul.mubr.bf16.vlgmr.msra.gmra.mxu0 %v2695_v39 }
 0x342   : > { %v2801_v40 = vpop.f32.mrf.mxu0 }
 0x343   : > { %v2802_v41 = vadd.f32 %v3110_v22, %v2801_v40 }
 0x344   : > { %v3470_v42 = vpop.f32.mrf.mxu0 }
 0x345   : > { %2808 = vst [vmem:[%s283_s26] sm:$0xff] %v2802_v41 }
 0x346   : > { %v2804_v43 = vpop.f32.mrf.mxu0 }
 0x347   : > { %v2805_v44 = vadd.f32 %v3110_v22, %v2804_v43 }
 0x348   : > { %v3471_v45 = vpop.f32.mrf.mxu0 }
 0x349   : > { %2809 = vst [vmem:[%s283_s26 + $0x8] sm:$0xff] %v2805_v44 }
 0x34a PF: > { %s17_s24 = sadd.s32 1, %s3742_s24  }
 0x34b   : > { %p14_p4 = scmp.ge.s32.totalorder %s17_s24, 4  }
 0x34d   :  { %16 = sbr.rel (!%p14_p4) target bundleno = 1 (0x1), region = 78 }

</bundles_post_ra>
